<compile_context>
chip_gen: v7x
topology: tpu7x:2x2x1
jax: 0.10.0
libtpu: 0.0.40
codegen_flags: <defaults>
</compile_context>

<pallas_src>
import functools

import jax
import jax.numpy as jnp
from jax.experimental import pallas as pl
from jax.experimental.pallas import tpu as pltpu


# --------------------------------------------------------------------------
# Shared attention + folded 1x1-conv math (used by both kernels).
#   d = x1 - trans_conv(bmm(attention, x1_2))
# --------------------------------------------------------------------------
def _attention_conv_delta(x1, x2, x12, wt, bt):
    tb, c, _ = x1.shape

    # energy[b, i, j] = sum_l x1[b, i, l] * x2[b, l, j]   == torch.bmm(x1, x2)
    energy = jax.lax.dot_general(
        x1, x2, dimension_numbers=(((2,), (1,)), ((0,), (0,))),
        preferred_element_type=jnp.float32)                       # (tb, C, C)

    # softmax over the last dim (approx reciprocal -> EUP slot)
    p = jnp.exp(energy - jnp.max(energy, axis=-1, keepdims=True))
    sm = p * pl.reciprocal(jnp.sum(p, axis=-1, keepdims=True), approx=True)

    # column renormalization: / (1e-9 + sum over dim=1)
    col = jnp.sum(sm, axis=1, keepdims=True)                      # (tb, 1, C)
    att = sm * pl.reciprocal(1e-9 + col, approx=True)             # (tb, C, C)

    # Fold the 1x1 conv into the attention:  t = (W @ att) @ x1_2 + b
    wt_b = jnp.broadcast_to(wt[None], (tb, c, c))                 # (tb, O, I)
    att2 = jax.lax.dot_general(
        wt_b, att, dimension_numbers=(((2,), (1,)), ((0,), (0,))),
        preferred_element_type=jnp.float32)                       # (tb, O, K)
    t = jax.lax.dot_general(
        att2, x12, dimension_numbers=(((2,), (1,)), ((0,), (0,))),
        preferred_element_type=jnp.float32) + bt[None]            # (tb, O, L)

    return x1 - t


# --------------------------------------------------------------------------
# Fully fused kernel (small B): attention + conv + BN(stats in-kernel) + ReLU + residual.
# --------------------------------------------------------------------------
def pct_fused_kernel(x1_ref, x2_ref, x12_ref, wt_ref, bt_ref,
                     gamma_ref, beta_ref, out_ref):
    x1 = x1_ref[...]                                              # (B, C, L)
    d = _attention_conv_delta(x1, x2_ref[...], x12_ref[...],
                              wt_ref[...], bt_ref[...])           # (B, C, L)

    b, _, l = d.shape
    inv_n = 1.0 / float(b * l)
    # centered (two-pass) BatchNorm statistics, biased variance (training mode)
    mean = jnp.sum(jnp.sum(d, axis=-1, keepdims=True),
                   axis=0, keepdims=True) * inv_n                 # (1, C, 1)
    dc = d - mean
    var = jnp.sum(jnp.sum(dc * dc, axis=-1, keepdims=True),
                  axis=0, keepdims=True) * inv_n                  # (1, C, 1)
    scale = gamma_ref[...][None] * jax.lax.rsqrt(var + 1e-5)      # (1, C, 1)
    bn = dc * scale + beta_ref[...][None]
    out_ref[...] = x1 + jnp.maximum(bn, 0.0)


# --------------------------------------------------------------------------
# Large-B pass 1: d = x1 - trans_conv(x_r) per batch tile + merged BN partials.
# --------------------------------------------------------------------------
def pct_pass1_kernel(x1_ref, x2_ref, x12_ref, wt_ref, bt_ref, d_ref, stats_ref):
    d = _attention_conv_delta(x1_ref[...], x2_ref[...], x12_ref[...],
                              wt_ref[...], bt_ref[...])           # (tb, C, L)
    d_ref[...] = d
    dsum = jnp.sum(jnp.sum(d, axis=-1, keepdims=True), axis=0)    # (C, 1)
    dsq = jnp.sum(jnp.sum(d * d, axis=-1, keepdims=True), axis=0)  # (C, 1)
    stats_ref[:, :, 0:1] = dsum[None]                             # (1, C, 2) block
    stats_ref[:, :, 1:2] = dsq[None]


# --------------------------------------------------------------------------
# Large-B pass 2 (lane-dense): scale*d + shift, relu, residual on (tb, C*L) rows.
# --------------------------------------------------------------------------
def pct_pass2_dense_kernel(x1_ref, d_ref, scale_ref, shift_ref, out_ref):
    bn = d_ref[...] * scale_ref[...] + shift_ref[...]
    out_ref[...] = x1_ref[...] + jnp.maximum(bn, 0.0)


# Fallback pass 2 in the original (tb, C, L) layout (used only when B has no
# multiple-of-8 divisor for the lane-dense sublane tile).
def pct_pass2_kernel(x1_ref, d_ref, scale_ref, shift_ref, out_ref):
    bn = d_ref[...] * scale_ref[...][None] + shift_ref[...][None]
    out_ref[...] = x1_ref[...] + jnp.maximum(bn, 0.0)


def _largest_divisor(n, max_tile, multiple):
    """Largest t <= max_tile with n % t == 0 and t % multiple == 0 (None if none)."""
    t = min(n, max_tile)
    while t >= 1:
        if n % t == 0 and t % multiple == 0:
            return t
        t -= 1
    return None


@functools.partial(jax.jit,
                   static_argnames=("batch_tile", "pass2_tile", "fused_max_b"))
def pct_start_forward(x1, x2, x1_2, w_t, b_t, gamma, beta, *,
                      batch_tile=128, pass2_tile=512, fused_max_b=128):
    """x1: (B, C, L), x2: (B, L, C), x1_2: (B, C, L) -> (B, C, L)."""
    B, C, L = x1.shape
    assert x2.shape == (B, L, C) and x1_2.shape == (B, C, L)
    f32 = jnp.float32
    x1 = x1.astype(f32)
    x2 = x2.astype(f32)
    x1_2 = x1_2.astype(f32)
    w_t = w_t.astype(f32)
    b_t = jnp.reshape(b_t, (C, 1)).astype(f32)
    gamma_c = jnp.reshape(gamma, (C, 1)).astype(f32)
    beta_c = jnp.reshape(beta, (C, 1)).astype(f32)

    # 32 MiB fits the scoped-VMEM default on v6e/v7x and raises v5e's 16 MiB default;
    # tile sizes below are chosen to stay well inside it on all generations.
    vmem_cap = 32 * 1024 * 1024

    # ---------------- Small batch: one fused launch, one grid step ----------------
    if B <= fused_max_b:
        return pl.pallas_call(
            pct_fused_kernel,
            out_shape=jax.ShapeDtypeStruct((B, C, L), f32),
            grid=(1,),
            in_specs=[
                pl.BlockSpec((B, C, L), lambda i: (0, 0, 0)),
                pl.BlockSpec((B, L, C), lambda i: (0, 0, 0)),
                pl.BlockSpec((B, C, L), lambda i: (0, 0, 0)),
                pl.BlockSpec((C, C), lambda i: (0, 0)),
                pl.BlockSpec((C, 1), lambda i: (0, 0)),
                pl.BlockSpec((C, 1), lambda i: (0, 0)),
                pl.BlockSpec((C, 1), lambda i: (0, 0)),
            ],
            out_specs=pl.BlockSpec((B, C, L), lambda i: (0, 0, 0)),
            compiler_params=pltpu.CompilerParams(vmem_limit_bytes=vmem_cap),
        )(x1, x2, x1_2, w_t, b_t, gamma_c, beta_c)

    # ---------------- Large batch: two passes, big tiles ----------------
    tb = _largest_divisor(B, batch_tile, 1)
    nblk = B // tb
    cp_par = pltpu.CompilerParams(dimension_semantics=("parallel",),
                                  vmem_limit_bytes=vmem_cap)

    d, stats = pl.pallas_call(
        pct_pass1_kernel,
        out_shape=(
            jax.ShapeDtypeStruct((B, C, L), f32),
            jax.ShapeDtypeStruct((nblk, C, 2), f32),
        ),
        grid=(nblk,),
        in_specs=[
            pl.BlockSpec((tb, C, L), lambda i: (i, 0, 0)),
            pl.BlockSpec((tb, L, C), lambda i: (i, 0, 0)),
            pl.BlockSpec((tb, C, L), lambda i: (i, 0, 0)),
            pl.BlockSpec((C, C), lambda i: (0, 0)),
            pl.BlockSpec((C, 1), lambda i: (0, 0)),
        ],
        out_specs=(
            pl.BlockSpec((tb, C, L), lambda i: (i, 0, 0)),
            pl.BlockSpec((1, C, 2), lambda i: (i, 0, 0)),
        ),
        compiler_params=cp_par,
    )(x1, x2, x1_2, w_t, b_t)

    # Tiny (C,)-sized cross-tile reduction + BN affine fold (stays in XLA).
    s = jnp.sum(stats, axis=0)                                    # (C, 2)
    inv_n = 1.0 / float(B * L)
    mean = s[:, 0] * inv_n
    # TODO(synk): single-pass E[d^2]-mean^2 can lose precision if d carries a large
    # offset; acceptable here (d is residual-like, mean ~ 0).
    var = s[:, 1] * inv_n - mean * mean
    inv_std = jax.lax.rsqrt(var + 1e-5)
    scale = gamma.astype(f32) * inv_std                           # (C,)
    shift = beta.astype(f32) - mean * scale                       # (C,)

    tb2 = _largest_divisor(B, pass2_tile, 8)
    if tb2 is not None:
        # Lane-dense elementwise pass: (B, C*L) = (B, 384) rows are full-lane vregs.
        # Reshapes below are contiguous (free) in the wrapper.
        x1f = jnp.reshape(x1, (B, C * L))
        df = jnp.reshape(d, (B, C * L))
        scale_row = jnp.repeat(scale, L)[None]                    # (1, C*L)
        shift_row = jnp.repeat(shift, L)[None]
        outf = pl.pallas_call(
            pct_pass2_dense_kernel,
            out_shape=jax.ShapeDtypeStruct((B, C * L), f32),
            grid=(B // tb2,),
            in_specs=[
                pl.BlockSpec((tb2, C * L), lambda i: (i, 0)),
                pl.BlockSpec((tb2, C * L), lambda i: (i, 0)),
                pl.BlockSpec((1, C * L), lambda i: (0, 0)),
                pl.BlockSpec((1, C * L), lambda i: (0, 0)),
            ],
            out_specs=pl.BlockSpec((tb2, C * L), lambda i: (i, 0)),
            compiler_params=cp_par,
        )(x1f, df, scale_row, shift_row)
        return jnp.reshape(outf, (B, C, L))

    # Fallback layout (only when B has no multiple-of-8 divisor <= pass2_tile).
    return pl.pallas_call(
        pct_pass2_kernel,
        out_shape=jax.ShapeDtypeStruct((B, C, L), f32),
        grid=(nblk,),
        in_specs=[
            pl.BlockSpec((tb, C, L), lambda i: (i, 0, 0)),
            pl.BlockSpec((tb, C, L), lambda i: (i, 0, 0)),
            pl.BlockSpec((C, 1), lambda i: (0, 0)),
            pl.BlockSpec((C, 1), lambda i: (0, 0)),
        ],
        out_specs=pl.BlockSpec((tb, C, L), lambda i: (i, 0, 0)),
        compiler_params=cp_par,
    )(x1, d, scale[:, None], shift[:, None])


# --------------------------------------------------------------------------
# Pure-JAX reference (mirrors the PyTorch module, training-mode BatchNorm).
# --------------------------------------------------------------------------
def pct_start_ref(x1, x2, x1_2, w_t, b_t, gamma, beta, eps=1e-5):
    hp = jax.lax.Precision.HIGHEST
    energy = jnp.einsum("bcl,blk->bck", x1, x2, precision=hp)
    energy = jax.nn.softmax(energy, axis=-1)
    attention = energy / (1e-9 + jnp.sum(energy, axis=1, keepdims=True))
    x_r = jnp.einsum("bck,bkl->bcl", attention, x1_2, precision=hp)
    t = jnp.einsum("oc,bcl->bol", w_t, x_r, precision=hp) + b_t[None]
    d = x1 - t
    mean = jnp.mean(d, axis=(0, 2), keepdims=True)
    var = jnp.mean((d - mean) ** 2, axis=(0, 2), keepdims=True)
    bn = (d - mean) * jax.lax.rsqrt(var + eps) * gamma[None, :, None] + beta[None, :, None]
    return x1 + jax.nn.relu(bn)


if __name__ == "__main__":
    # Shapes from the module docstring: x1 (b, 12, 32), x2 (b, 32, 12), x1_2 (b, 12, 32).
    C, L = 12, 32
    key = jax.random.PRNGKey(0)
    kw, kb, ksmall, klarge = jax.random.split(key, 4)
    w_t = jax.random.uniform(kw, (C, C), jnp.float32, -0.3, 0.3)   # Conv1d(C, C, 1).weight
    b_t = jax.random.uniform(kb, (C, 1), jnp.float32, -0.3, 0.3)   # Conv1d(C, C, 1).bias
    gamma = jnp.ones((C,), jnp.float32)                            # fresh BatchNorm1d affine
    beta = jnp.zeros((C,), jnp.float32)

    def run_case(B, k):
        k1, k2, k3 = jax.random.split(k, 3)
        x1 = jax.random.normal(k1, (B, C, L), dtype=jnp.float32)
        x2 = jax.random.normal(k2, (B, L, C), dtype=jnp.float32)
        x1_2 = jax.random.normal(k3, (B, C, L), dtype=jnp.float32)
        out = jax.block_until_ready(
            pct_start_forward(x1, x2, x1_2, w_t, b_t, gamma, beta))
        assert out.shape == (B, C, L) and out.dtype == jnp.float32
        assert bool(jnp.all(jnp.isfinite(out)))
        ref = pct_start_ref(x1, x2, x1_2, w_t, b_t, gamma, beta)
        err = float(jnp.max(jnp.abs(out - ref)))
        # Loose-ish tolerance: robust to MXU f32 multi-pass precision + approx
        # reciprocals (~1e-3 rel); semantic errors would be O(0.1-1).
        assert err < 2e-2, f"B={B}: kernel vs reference mismatch, max abs err = {err}"
        return err

    run_case(8, ksmall)       # small batch -> fully fused single-launch kernel
    run_case(1024, klarge)    # large batch -> tiled two-pass path (tb=128, lane-dense pass 2)
    print("KERNEL_OK")
</pallas_src>

<mosaic_0001>
module attributes {stable_mosaic.version = 11 : i64} {
  func.func @pct_fused_kernel(%arg0: i32, %arg1: memref<8x12x32xf32, #tpu.memory_space<vmem>>, %arg2: memref<8x32x12xf32, #tpu.memory_space<vmem>>, %arg3: memref<8x12x32xf32, #tpu.memory_space<vmem>>, %arg4: memref<12x12xf32, #tpu.memory_space<vmem>>, %arg5: memref<12x1xf32, #tpu.memory_space<vmem>>, %arg6: memref<12x1xf32, #tpu.memory_space<vmem>>, %arg7: memref<12x1xf32, #tpu.memory_space<vmem>>, %arg8: memref<8x12x32xf32, #tpu.memory_space<vmem>>) attributes {dimension_semantics = [#tpu.dimension_semantics<arbitrary>], iteration_bounds = array<i64: 1>, scalar_prefetch = 0 : i64, scratch_operands = 0 : i64, tpu.core_type = #tpu.core_type<tc>, window_params = [{pipeline_mode = #tpu.pipeline_mode<synchronous>, transform_indices = @transform_0, window_bounds = array<i64: 8, 12, 32>}, {pipeline_mode = #tpu.pipeline_mode<synchronous>, transform_indices = @transform_1, window_bounds = array<i64: 8, 32, 12>}, {pipeline_mode = #tpu.pipeline_mode<synchronous>, transform_indices = @transform_2, window_bounds = array<i64: 8, 12, 32>}, {pipeline_mode = #tpu.pipeline_mode<synchronous>, transform_indices = @transform_3, window_bounds = array<i64: 12, 12>}, {pipeline_mode = #tpu.pipeline_mode<synchronous>, transform_indices = @transform_4, window_bounds = array<i64: 12, 1>}, {pipeline_mode = #tpu.pipeline_mode<synchronous>, transform_indices = @transform_5, window_bounds = array<i64: 12, 1>}, {pipeline_mode = #tpu.pipeline_mode<synchronous>, transform_indices = @transform_6, window_bounds = array<i64: 12, 1>}, {pipeline_mode = #tpu.pipeline_mode<synchronous>, transform_indices = @transform_7, window_bounds = array<i64: 8, 12, 32>}]} {
    %c0 = arith.constant 0 : index
    %c0_0 = arith.constant 0 : index
    %c0_1 = arith.constant 0 : index
    %0 = vector.load %arg1[%c0, %c0_0, %c0_1] : memref<8x12x32xf32, #tpu.memory_space<vmem>>, vector<8x12x32xf32>
    %c0_2 = arith.constant 0 : index
    %c0_3 = arith.constant 0 : index
    %c0_4 = arith.constant 0 : index
    %1 = vector.load %arg2[%c0_2, %c0_3, %c0_4] : memref<8x32x12xf32, #tpu.memory_space<vmem>>, vector<8x32x12xf32>
    %c0_5 = arith.constant 0 : index
    %c0_6 = arith.constant 0 : index
    %c0_7 = arith.constant 0 : index
    %2 = vector.load %arg3[%c0_5, %c0_6, %c0_7] : memref<8x12x32xf32, #tpu.memory_space<vmem>>, vector<8x12x32xf32>
    %c0_8 = arith.constant 0 : index
    %c0_9 = arith.constant 0 : index
    %3 = vector.load %arg4[%c0_8, %c0_9] : memref<12x12xf32, #tpu.memory_space<vmem>>, vector<12x12xf32>
    %c0_10 = arith.constant 0 : index
    %c0_11 = arith.constant 0 : index
    %4 = vector.load %arg5[%c0_10, %c0_11] : memref<12x1xf32, #tpu.memory_space<vmem>>, vector<12x1xf32>
    %cst = arith.constant dense<0.000000e+00> : vector<8x12x12xf32>
    %5 = tpu.matmul %0, %1, %cst {dimension_numbers = #tpu.dot_dimension_numbers<[2], [1], [1], [2], [0, 0, 0, 1, 1, 2], [0], [0]>} : vector<8x12x32xf32>, vector<8x32x12xf32>, vector<8x12x12xf32> -> vector<8x12x12xf32>
    %cst_12 = arith.constant dense<0xFF800000> : vector<8x12xf32>
    %6 = vector.multi_reduction <maximumf>, %5, %cst_12 [2] : vector<8x12x12xf32> to vector<8x12xf32>
    %7 = vector.shape_cast %6 : vector<8x12xf32> to vector<8x12x1xf32>
    %8 = vector.broadcast %7 : vector<8x12x1xf32> to vector<8x12x12xf32>
    %9 = arith.subf %5, %8 : vector<8x12x12xf32>
    %10 = math.exp %9 : vector<8x12x12xf32>
    %cst_13 = arith.constant dense<0.000000e+00> : vector<8x12xf32>
    %11 = vector.multi_reduction <add>, %10, %cst_13 [2] : vector<8x12x12xf32> to vector<8x12xf32>
    %12 = vector.shape_cast %11 : vector<8x12xf32> to vector<8x12x1xf32>
    %13 = tpu.reciprocal %12 {approx = true} : vector<8x12x1xf32> -> vector<8x12x1xf32>
    %14 = vector.broadcast %13 : vector<8x12x1xf32> to vector<8x12x12xf32>
    %15 = arith.mulf %10, %14 : vector<8x12x12xf32>
    %cst_14 = arith.constant dense<0.000000e+00> : vector<8x12xf32>
    %16 = vector.multi_reduction <add>, %15, %cst_14 [1] : vector<8x12x12xf32> to vector<8x12xf32>
    %17 = vector.shape_cast %16 : vector<8x12xf32> to vector<8x1x12xf32>
    %cst_15 = arith.constant 9.99999971E-10 : f32
    %18 = vector.broadcast %cst_15 : f32 to vector<8x1x12xf32>
    %19 = arith.addf %18, %17 : vector<8x1x12xf32>
    %20 = tpu.reciprocal %19 {approx = true} : vector<8x1x12xf32> -> vector<8x1x12xf32>
    %21 = vector.broadcast %20 : vector<8x1x12xf32> to vector<8x12x12xf32>
    %22 = arith.mulf %15, %21 : vector<8x12x12xf32>
    %23 = vector.shape_cast %3 : vector<12x12xf32> to vector<1x12x12xf32>
    %24 = vector.shape_cast %23 : vector<1x12x12xf32> to vector<1x12x12xf32>
    %25 = vector.broadcast %24 : vector<1x12x12xf32> to vector<8x12x12xf32>
    %cst_16 = arith.constant dense<0.000000e+00> : vector<8x12x12xf32>
    %26 = tpu.matmul %25, %22, %cst_16 {dimension_numbers = #tpu.dot_dimension_numbers<[2], [1], [1], [2], [0, 0, 0, 1, 1, 2], [0], [0]>} : vector<8x12x12xf32>, vector<8x12x12xf32>, vector<8x12x12xf32> -> vector<8x12x12xf32>
    %cst_17 = arith.constant dense<0.000000e+00> : vector<8x12x32xf32>
    %27 = tpu.matmul %26, %2, %cst_17 {dimension_numbers = #tpu.dot_dimension_numbers<[2], [1], [1], [2], [0, 0, 0, 1, 1, 2], [0], [0]>} : vector<8x12x12xf32>, vector<8x12x32xf32>, vector<8x12x32xf32> -> vector<8x12x32xf32>
    %28 = vector.shape_cast %4 : vector<12x1xf32> to vector<1x12x1xf32>
    %29 = vector.broadcast %28 : vector<1x12x1xf32> to vector<8x12x32xf32>
    %30 = arith.addf %27, %29 : vector<8x12x32xf32>
    %31 = arith.subf %0, %30 : vector<8x12x32xf32>
    %cst_18 = arith.constant dense<0.000000e+00> : vector<8x12xf32>
    %32 = vector.multi_reduction <add>, %31, %cst_18 [2] : vector<8x12x32xf32> to vector<8x12xf32>
    %33 = vector.shape_cast %32 : vector<8x12xf32> to vector<8x12x1xf32>
    %cst_19 = arith.constant dense<0.000000e+00> : vector<12x1xf32>
    %34 = vector.multi_reduction <add>, %33, %cst_19 [0] : vector<8x12x1xf32> to vector<12x1xf32>
    %35 = vector.shape_cast %34 : vector<12x1xf32> to vector<1x12x1xf32>
    %cst_20 = arith.constant 3.906250e-03 : f32
    %36 = vector.broadcast %cst_20 : f32 to vector<1x12x1xf32>
    %37 = arith.mulf %35, %36 : vector<1x12x1xf32>
    %38 = vector.broadcast %37 : vector<1x12x1xf32> to vector<8x12x32xf32>
    %39 = arith.subf %31, %38 : vector<8x12x32xf32>
    %40 = arith.mulf %39, %39 : vector<8x12x32xf32>
    %cst_21 = arith.constant dense<0.000000e+00> : vector<8x12xf32>
    %41 = vector.multi_reduction <add>, %40, %cst_21 [2] : vector<8x12x32xf32> to vector<8x12xf32>
    %42 = vector.shape_cast %41 : vector<8x12xf32> to vector<8x12x1xf32>
    %cst_22 = arith.constant dense<0.000000e+00> : vector<12x1xf32>
    %43 = vector.multi_reduction <add>, %42, %cst_22 [0] : vector<8x12x1xf32> to vector<12x1xf32>
    %44 = vector.shape_cast %43 : vector<12x1xf32> to vector<1x12x1xf32>
    %cst_23 = arith.constant 3.906250e-03 : f32
    %45 = vector.broadcast %cst_23 : f32 to vector<1x12x1xf32>
    %46 = arith.mulf %44, %45 : vector<1x12x1xf32>
    %c0_24 = arith.constant 0 : index
    %c0_25 = arith.constant 0 : index
    %47 = vector.load %arg6[%c0_24, %c0_25] : memref<12x1xf32, #tpu.memory_space<vmem>>, vector<12x1xf32>
    %48 = vector.shape_cast %47 : vector<12x1xf32> to vector<1x12x1xf32>
    %cst_26 = arith.constant 9.99999974E-6 : f32
    %49 = vector.broadcast %cst_26 : f32 to vector<1x12x1xf32>
    %50 = arith.addf %46, %49 : vector<1x12x1xf32>
    %51 = math.rsqrt %50 : vector<1x12x1xf32>
    %52 = arith.mulf %48, %51 : vector<1x12x1xf32>
    %53 = vector.broadcast %52 : vector<1x12x1xf32> to vector<8x12x32xf32>
    %54 = arith.mulf %39, %53 : vector<8x12x32xf32>
    %c0_27 = arith.constant 0 : index
    %c0_28 = arith.constant 0 : index
    %55 = vector.load %arg7[%c0_27, %c0_28] : memref<12x1xf32, #tpu.memory_space<vmem>>, vector<12x1xf32>
    %56 = vector.shape_cast %55 : vector<12x1xf32> to vector<1x12x1xf32>
    %57 = vector.broadcast %56 : vector<1x12x1xf32> to vector<8x12x32xf32>
    %58 = arith.addf %54, %57 : vector<8x12x32xf32>
    %cst_29 = arith.constant 0.000000e+00 : f32
    %59 = vector.broadcast %cst_29 : f32 to vector<8x12x32xf32>
    %60 = arith.maximumf %58, %59 : vector<8x12x32xf32>
    %61 = arith.addf %0, %60 : vector<8x12x32xf32>
    %c0_30 = arith.constant 0 : index
    %c0_31 = arith.constant 0 : index
    %c0_32 = arith.constant 0 : index
    %62 = vector.load %arg8[%c0_30, %c0_31, %c0_32] : memref<8x12x32xf32, #tpu.memory_space<vmem>>, vector<8x12x32xf32>
    tpu.vector_store %arg8[%c0_30, %c0_31, %c0_32], %61 {strides = array<i32>} : memref<8x12x32xf32, #tpu.memory_space<vmem>>, vector<8x12x32xf32>,
    return
  }
  func.func @transform_0(%arg0: i32) -> (i32, i32, i32) {
    %c0_i32 = arith.constant 0 : i32
    %c0_i32_0 = arith.constant 0 : i32
    %c0_i32_1 = arith.constant 0 : i32
    %c0_i32_2 = arith.constant 0 : i32
    return %c0_i32, %c0_i32_0, %c0_i32_1 : i32, i32, i32
  }
  func.func @transform_1(%arg0: i32) -> (i32, i32, i32) {
    %c0_i32 = arith.constant 0 : i32
    %c0_i32_0 = arith.constant 0 : i32
    %c0_i32_1 = arith.constant 0 : i32
    %c0_i32_2 = arith.constant 0 : i32
    return %c0_i32, %c0_i32_0, %c0_i32_1 : i32, i32, i32
  }
  func.func @transform_2(%arg0: i32) -> (i32, i32, i32) {
    %c0_i32 = arith.constant 0 : i32
    %c0_i32_0 = arith.constant 0 : i32
    %c0_i32_1 = arith.constant 0 : i32
    %c0_i32_2 = arith.constant 0 : i32
    return %c0_i32, %c0_i32_0, %c0_i32_1 : i32, i32, i32
  }
  func.func @transform_3(%arg0: i32) -> (i32, i32) {
    %c0_i32 = arith.constant 0 : i32
    %c0_i32_0 = arith.constant 0 : i32
    %c0_i32_1 = arith.constant 0 : i32
    return %c0_i32, %c0_i32_0 : i32, i32
  }
  func.func @transform_4(%arg0: i32) -> (i32, i32) {
    %c0_i32 = arith.constant 0 : i32
    %c0_i32_0 = arith.constant 0 : i32
    %c0_i32_1 = arith.constant 0 : i32
    return %c0_i32, %c0_i32_0 : i32, i32
  }
  func.func @transform_5(%arg0: i32) -> (i32, i32) {
    %c0_i32 = arith.constant 0 : i32
    %c0_i32_0 = arith.constant 0 : i32
    %c0_i32_1 = arith.constant 0 : i32
    return %c0_i32, %c0_i32_0 : i32, i32
  }
  func.func @transform_6(%arg0: i32) -> (i32, i32) {
    %c0_i32 = arith.constant 0 : i32
    %c0_i32_0 = arith.constant 0 : i32
    %c0_i32_1 = arith.constant 0 : i32
    return %c0_i32, %c0_i32_0 : i32, i32
  }
  func.func @transform_7(%arg0: i32) -> (i32, i32, i32) {
    %c0_i32 = arith.constant 0 : i32
    %c0_i32_0 = arith.constant 0 : i32
    %c0_i32_1 = arith.constant 0 : i32
    %c0_i32_2 = arith.constant 0 : i32
    return %c0_i32, %c0_i32_0, %c0_i32_1 : i32, i32, i32
  }
}

</mosaic_0001>

<bundles_post_ra>
// kernel: pct_start_forward.1
= control target key start
LH: loop header
LB: loop body
LE: loop exit
PB: predicated region body
PF: predicated region fallthrough
CT: control target
= control target key end

     0   :  { %vm94_vm0 = vcmask 261120   ;;  %vm747_vm1 = vcmask 93184   ;;  %vm743_vm2 = vcmask 97280   ;;  %vm1031_vm3 = vcmask 1043456   ;;  %s4276_s1 = inlined_call_operand.vmem [shape: f32[8,32,12], index: 1, kind: input, shape index: {}]   ;;  %s4277_s0 = inlined_call_operand.vmem [shape: f32[8,12,32], index: 0, kind: input, shape index: {}]   ;;  %s4278_s3 = inlined_call_operand.vmem [shape: f32[12,12], index: 3, kind: input, shape index: {}]   ;;  %s4279_s2 = inlined_call_operand.vmem [shape: f32[8,12,32], index: 2, kind: input, shape index: {}]   ;;  %s4280_s4 = inlined_call_operand.vmem [shape: f32[12,1], index: 4, kind: input, shape index: {}]   ;;  %s4281_s5 = inlined_call_operand.vmem [shape: f32[12,1], index: 5, kind: input, shape index: {}]   ;;  %s4282_s6 = inlined_call_operand.vmem [shape: f32[12,1], index: 6, kind: input, shape index: {}]   ;;  %s4283_s7 = inlined_call_operand.vmem [shape: f32[8,12,32], index: 7, kind: output, shape index: {}]  }
   0x1   :  { %v42_v0 = vld [vmem:[%s4276_s1] sm:$0xff]  ;;  %v43_v1 = vld [vmem:[%s4276_s1 + $0x8] sm:$0xff]  ;;  %v44_v5 = vld [vmem:[%s4276_s1 + $0x10] sm:$0xff]  ;;  %vm3285_vm4 = vmmov 1   ;;  %vm2357_vm6 = vcmask 257024  }
   0x2   :  { %v46_v2 = vld [vmem:[%s4276_s1 + $0x20] sm:$0xff]  ;;  %v3021_v3 = vpack.c.bf16 %v43_v1, %v42_v0  ;;  %v47_v4 = vld [vmem:[%s4276_s1 + $0x28] sm:$0xff]  ;;  %v45_v6 = vld [vmem:[%s4276_s1 + $0x18] sm:$0xff] }
   0x3   :  { %v3029_v7 = vpack.c.bf16 %v47_v4, %v46_v2  ;;  %v3025_v8 = vpack.c.bf16 %v45_v6, %v44_v5  ;;  %v48_v9 = vld [vmem:[%s4276_s1 + $0x30] sm:$0xff]  ;;  %v49_v10 = vld [vmem:[%s4276_s1 + $0x38] sm:$0xff]  ;;  %v26_v11 = vld [vmem:[%s4277_s0] sm:$0xff] }
   0x4   :  { %3022 = vmatprep.subr.bf16.mxu0 %v3021_v3  ;;  %v3033_v12 = vpack.c.bf16 %v49_v10, %v48_v9  ;;  %2829 = vmatprep.mubr.msk.f32.mxu0 %vm94_vm0, %v26_v11  ;;  %v28_v13 = vld [vmem:[%s4277_s0 + $0x10] sm:$0xff]  ;;  %v50_v14 = vld [vmem:[%s4276_s1 + $0x40] sm:$0xff]  ;;  %v51_v15 = vld [vmem:[%s4276_s1 + $0x48] sm:$0xff] }
   0x5   :  { %3030 = vmatprep.subr.bf16.mxu1 %v3029_v7  ;;  %3024 = vmatpush3.bf16.msra.mxu0 %v3021_v3  ;;  %v3037_v16 = vpack.c.bf16 %v51_v15, %v50_v14  ;;  %v54_v17 = vld [vmem:[%s4276_s1 + $0x60] sm:$0xff]  ;;  %v55_v18 = vld [vmem:[%s4276_s1 + $0x68] sm:$0xff]  ;;  %v52_v19 = vld [vmem:[%s4276_s1 + $0x50] sm:$0xff] }
   0x6   :  { %3032 = vmatpush3.bf16.msra.mxu1 %v3029_v7  ;;  %3026 = vmatprep.subr.bf16.mxu0 %v3025_v8  ;;  %v53_v20 = vld [vmem:[%s4276_s1 + $0x58] sm:$0xff]  ;;  %v3045_v21 = vpack.c.bf16 %v55_v18, %v54_v17  ;;  %v56_v22 = vld [vmem:[%s4276_s1 + $0x70] sm:$0xff]  ;;  %v27_v24 = vld [vmem:[%s4277_s0 + $0x8] sm:$0xf] }
   0x7   :  { %3034 = vmatprep.subr.bf16.mxu1 %v3033_v12  ;;  %2840 = vmatprep.mubr.msk.f32.mxu1 %vm94_vm0, %v28_v13  ;;  %v57_v23 = vld [vmem:[%s4276_s1 + $0x78] sm:$0xff]  ;;  %v3041_v26 = vpack.c.bf16 %v53_v20, %v52_v19  ;;  %v58_v28 = vld [vmem:[%s4276_s1 + $0x80] sm:$0xff]  ;;  %v59_v29 = vld [vmem:[%s4276_s1 + $0x88] sm:$0xff] }
   0x8   :  { %v29_v25 = vld [vmem:[%s4277_s0 + $0x18] sm:$0xf]  ;;  %v3049_v27 = vpack.c.bf16 %v57_v23, %v56_v22  ;;  %v30_v30 = vld [vmem:[%s4277_s0 + $0x20] sm:$0xff]  ;;  %v63_v32 = vld [vmem:[%s4276_s1 + $0xa8] sm:$0xff]  ;;  %v3053_v34 = vpack.c.bf16 %v59_v29, %v58_v28 }
   0x9   :  { %3028 = vmatpush3.bf16.msra.mxu0 %v3025_v8  ;;  %v62_v31 = vld [vmem:[%s4276_s1 + $0xa0] sm:$0xff]  ;;  %v32_v33 = vld [vmem:[%s4277_s0 + $0x30] sm:$0xff]  ;;  %v61_v36 = vld [vmem:[%s4276_s1 + $0x98] sm:$0xff] }
   0xa   :  { %3036 = vmatpush3.bf16.msra.mxu1 %v3033_v12  ;;  %3038 = vmatprep.subr.bf16.mxu0 %v3037_v16  ;;  %v60_v35 = vld [vmem:[%s4276_s1 + $0x90] sm:$0xff]  ;;  %v3061_v37 = vpack.c.bf16 %v63_v32, %v62_v31  ;;  %v65_v39 = vld [vmem:[%s4276_s1 + $0xb8] sm:$0xff]  ;;  %v31_v40 = vld [vmem:[%s4277_s0 + $0x28] sm:$0xf] }
   0xb   :  { %3046 = vmatprep.subr.bf16.mxu1 %v3045_v21  ;;  %v64_v38 = vld [vmem:[%s4276_s1 + $0xb0] sm:$0xff]  ;;  %v33_v41 = vld [vmem:[%s4277_s0 + $0x38] sm:$0xf]  ;;  %v3057_v42 = vpack.c.bf16 %v61_v36, %v60_v35  ;;  %v66_v44 = vld [vmem:[%s4276_s1 + $0xc0] sm:$0xff] }
   0xc   :  { %2830 = vmatmul.mubr.msk.f32.vlgmr.msra.gmra.mrb[0].mxu0 %vm94_vm0, %v27_v24  ;;  %v3065_v43 = vpack.c.bf16 %v65_v39, %v64_v38  ;;  %v67_v45 = vld [vmem:[%s4276_s1 + $0xc8] sm:$0xff]  ;;  %v34_v46 = vld [vmem:[%s4277_s0 + $0x40] sm:$0xff]  ;;  %v36_v49 = vld [vmem:[%s4277_s0 + $0x50] sm:$0xff] }
   0xd   :  { %2841 = vmatmul.mubr.msk.f32.vlgmr.msra.gmra.mrb[0].mxu1 %vm94_vm0, %v29_v25  ;;  %3040 = vmatpush3.bf16.msra.mxu0 %v3037_v16  ;;  %v70_v47 = vld [vmem:[%s4276_s1 + $0xe0] sm:$0xff]  ;;  %v71_v48 = vld [vmem:[%s4276_s1 + $0xe8] sm:$0xff]  ;;  %v3069_v50 = vpack.c.bf16 %v67_v45, %v66_v44  ;;  %v68_v51 = vld [vmem:[%s4276_s1 + $0xd0] sm:$0xff] }
   0xe   :  { %3042 = vmatprep.subr.bf16.mxu0 %v3041_v26  ;;  %3048 = vmatpush3.bf16.msra.mxu1 %v3045_v21  ;;  %v69_v52 = vld [vmem:[%s4276_s1 + $0xd8] sm:$0xff]  ;;  %v3077_v53 = vpack.c.bf16 %v71_v48, %v70_v47  ;;  %v72_v54 = vld [vmem:[%s4276_s1 + $0xf0] sm:$0xff]  ;;  %v35_v56 = vld [vmem:[%s4277_s0 + $0x48] sm:$0xf] }
   0xf   :  { %2851 = vmatprep.mubr.msk.f32.mxu0 %vm94_vm0, %v30_v30  ;;  %3050 = vmatprep.subr.bf16.mxu1 %v3049_v27  ;;  %v73_v55 = vld [vmem:[%s4276_s1 + $0xf8] sm:$0xff]  ;;  %v3073_v58 = vpack.c.bf16 %v69_v52, %v68_v51  ;;  %v38_v60 = vld [vmem:[%s4277_s0 + $0x60] sm:$0xff]  ;;  %v40_v61 = vld [vmem:[%s4277_s0 + $0x70] sm:$0xff] }
  0x10   :  { %2862 = vmatprep.mubr.msk.f32.mxu1 %vm94_vm0, %v32_v33  ;;  %v37_v57 = vld [vmem:[%s4277_s0 + $0x58] sm:$0xf]  ;;  %v3081_v59 = vpack.c.bf16 %v73_v55, %v72_v54  ;;  %v39_v62 = vld [vmem:[%s4277_s0 + $0x68] sm:$0xf]  ;;  %vm3691_vm5 = vmpackc.low %vm1031_vm3, %vm3285_vm4 }
  0x11   :  { %3044 = vmatpush3.bf16.msra.mxu0 %v3041_v26  ;;  %v41_v63 = vld [vmem:[%s4277_s0 + $0x78] sm:$0xf] }
  0x12   :  { %3054 = vmatprep.subr.bf16.mxu0 %v3053_v34  ;;  %3052 = vmatpush3.bf16.msra.mxu1 %v3049_v27 }
  0x13   :  { %3062 = vmatprep.subr.bf16.mxu1 %v3061_v37 }
  0x14   :  { %2852 = vmatmul.mubr.msk.f32.vlgmr.msra.gmra.mrb[2].mxu0 %vm94_vm0, %v31_v40 }
  0x15   :  { %3056 = vmatpush3.bf16.msra.mxu0 %v3053_v34  ;;  %2863 = vmatmul.mubr.msk.f32.vlgmr.msra.gmra.mrb[2].mxu1 %vm94_vm0, %v33_v41 }
  0x16   :  { %3058 = vmatprep.subr.bf16.mxu0 %v3057_v42  ;;  %3064 = vmatpush3.bf16.msra.mxu1 %v3061_v37 }
  0x17   :  { %2873 = vmatprep.mubr.msk.f32.mxu0 %vm94_vm0, %v34_v46  ;;  %3066 = vmatprep.subr.bf16.mxu1 %v3065_v43 }
  0x18   :  { %2884 = vmatprep.mubr.msk.f32.mxu1 %vm94_vm0, %v36_v49 }
  0x19   :  { %3060 = vmatpush3.bf16.msra.mxu0 %v3057_v42 }
  0x1a   :  { %3070 = vmatprep.subr.bf16.mxu0 %v3069_v50  ;;  %3068 = vmatpush3.bf16.msra.mxu1 %v3065_v43 }
  0x1b   :  { %3078 = vmatprep.subr.bf16.mxu1 %v3077_v53 }
  0x1c   :  { %2874 = vmatmul.mubr.msk.f32.vlgmr.msra.gmra.mrb[4].mxu0 %vm94_vm0, %v35_v56 }
  0x1d   :  { %3072 = vmatpush3.bf16.msra.mxu0 %v3069_v50  ;;  %2885 = vmatmul.mubr.msk.f32.vlgmr.msra.gmra.mrb[4].mxu1 %vm94_vm0, %v37_v57 }
  0x1e   :  { %3074 = vmatprep.subr.bf16.mxu0 %v3073_v58  ;;  %3080 = vmatpush3.bf16.msra.mxu1 %v3077_v53 }
  0x1f   :  { %2895 = vmatprep.mubr.msk.f32.mxu0 %vm94_vm0, %v38_v60  ;;  %3082 = vmatprep.subr.bf16.mxu1 %v3081_v59 }
  0x20   :  { %2906 = vmatprep.mubr.msk.f32.mxu1 %vm94_vm0, %v40_v61 }
  0x21   :  { %3076 = vmatpush3.bf16.msra.mxu0 %v3073_v58 }
  0x22   :  { %3084 = vmatpush3.bf16.msra.mxu1 %v3081_v59 }
  0x24   :  { %2896 = vmatmul.mubr.msk.f32.vlgmr.msra.gmra.mrb[6].mxu0 %vm94_vm0, %v39_v62 }
  0x25   :  { %2907 = vmatmul.mubr.msk.f32.vlgmr.msra.gmra.mrb[6].mxu1 %vm94_vm0, %v41_v63 }
  0xdf   :  { %v2831_v0 = vpop.f32.mrb[0].mxu0 }
  0xe0   :  { %v2842_v1 = vpop.f32.mrb[0].mxu1  ;;  %v167_v2 = vpop.f32.mrb[1].mxu0  ;;  %v748_v3 = vsel %vm747_vm1, %v2831_v0, -inf }
  0xe1   :  { %v754_v4 = vsel %vm747_vm1, %v2842_v1, -inf  ;;  %749 = vmax.xlane.f32.xlu0 %v748_v3  ;;  %v248_v5 = vpop.f32.mrb[1].mxu1  ;;  %v744_v7 = vsel %vm743_vm2, %v167_v2, -inf }
  0xe2   :  { %755 = vmax.xlane.f32.xlu1 %v754_v4  ;;  %v751_v6 = vsel %vm743_vm2, %v248_v5, -inf }
  0xe5   :  { %745 = vmax.xlane.f32.xlu0 %v744_v7 }
  0xe6   :  { %752 = vmax.xlane.f32.xlu1 %v751_v6 }
  0xe7   :  { %v2853_v8 = vpop.f32.mrb[2].mxu0 }
  0xe8   :  { %v329_v9 = vpop.f32.mrb[3].mxu0  ;;  %v760_v10 = vsel %vm747_vm1, %v2853_v8, -inf  ;;  %v2864_v11 = vpop.f32.mrb[2].mxu1 }
  0xe9   :  { %v757_v12 = vsel %vm743_vm2, %v329_v9, -inf  ;;  %v410_v13 = vpop.f32.mrb[3].mxu1  ;;  %v766_v14 = vsel %vm747_vm1, %v2864_v11, -inf }
  0xea   :  { %761 = vmax.xlane.f32.xlu1 %v760_v10  ;;  %758 = vmax.xlane.f32.xlu0 %v757_v12  ;;  %v763_v15 = vsel %vm743_vm2, %v410_v13, -inf }
  0xee   :  { %767 = vmax.xlane.f32.xlu1 %v766_v14  ;;  %764 = vmax.xlane.f32.xlu0 %v763_v15 }
  0xef   :  { %v3495_v16 = vpop.f32.mrb[4].mxu0 }
  0xf0   :  { %v3497_v17 = vpop.f32.mrb[5].mxu0  ;;  %v772_v18 = vsel %vm747_vm1, %v3495_v16, -inf  ;;  %v3501_v19 = vpop.f32.mrb[4].mxu1 }
  0xf1   :  { %v769_v20 = vsel %vm743_vm2, %v3497_v17, -inf  ;;  %v3505_v21 = vpop.f32.mrb[5].mxu1  ;;  %v778_v22 = vsel %vm747_vm1, %v3501_v19, -inf }
  0xf2   :  { %773 = vmax.xlane.f32.xlu1 %v772_v18  ;;  %770 = vmax.xlane.f32.xlu0 %v769_v20  ;;  %v775_v23 = vsel %vm743_vm2, %v3505_v21, -inf }
  0xf6   :  { %779 = vmax.xlane.f32.xlu1 %v778_v22  ;;  %776 = vmax.xlane.f32.xlu0 %v775_v23 }
  0xf7   :  { %v3511_v24 = vpop.f32.mrb[6].mxu0 }
  0xf8   :  { %v3513_v25 = vpop.f32.mrb[7].mxu0  ;;  %v784_v26 = vsel %vm747_vm1, %v3511_v24, -inf  ;;  %v3517_v27 = vpop.f32.mrb[6].mxu1 }
  0xf9   :  { %v781_v28 = vsel %vm743_vm2, %v3513_v25, -inf  ;;  %v3521_v29 = vpop.f32.mrb[7].mxu1  ;;  %v790_v30 = vsel %vm747_vm1, %v3517_v27, -inf }
  0xfa   :  { %785 = vmax.xlane.f32.xlu1 %v784_v26  ;;  %782 = vmax.xlane.f32.xlu0 %v781_v28  ;;  %v787_v31 = vsel %vm743_vm2, %v3521_v29, -inf }
  0xfe   :  { %791 = vmax.xlane.f32.xlu1 %v790_v30  ;;  %788 = vmax.xlane.f32.xlu0 %v787_v31 }
 0x16e   :  { %v750_v32 = vpop.xlane.xlu0 %749 }
 0x16f   :  { %v756_v33 = vpop.xlane.xlu1 %755  ;;  %v794_v34 = vsub.f32 %v2831_v0, %v750_v32 }
 0x170   :  { %v796_v35 = vsub.f32 %v2842_v1, %v756_v33 }
 0x171   :  { %v811_v36 = vmul.f32 1.442695, %v794_v34 }
 0x172   :  { %v815_v37 = vmul.f32 1.442695, %v796_v35  ;;  %v746_v38 = vpop.xlane.xlu0 %745 }
 0x173   :  { %3185 = vpow2.f32 %v811_v36  ;;  %v753_v39 = vpop.xlane.xlu1 %752  ;;  %v793_v40 = vsub.f32 %v167_v2, %v746_v38 }
 0x174   :  { %v795_v41 = vsub.f32 %v248_v5, %v753_v39  ;;  %3187 = vpow2.f32 %v815_v37 }
 0x175   :  { %v809_v42 = vmul.f32 1.442695, %v793_v40 }
 0x176   :  { %v813_v43 = vmul.f32 1.442695, %v795_v41 }
 0x177   :  { %3189 = vpow2.f32 %v809_v42  ;;  %v762_v44 = vpop.xlane.xlu1 %761  ;;  %v759_v45 = vpop.xlane.xlu0 %758 }
 0x178   :  { %v798_v46 = vsub.f32 %v2853_v8, %v762_v44  ;;  %v797_v47 = vsub.f32 %v329_v9, %v759_v45  ;;  %3191 = vpow2.f32 %v813_v43 }
 0x17a   :  { %v819_v48 = vmul.f32 1.442695, %v798_v46  ;;  %v817_v49 = vmul.f32 1.442695, %v797_v47 }
 0x17b   :  { %v768_v50 = vpop.xlane.xlu1 %767  ;;  %v765_v51 = vpop.xlane.xlu0 %764 }
 0x17c   :  { %3193 = vpow2.f32 %v819_v48  ;;  %v800_v52 = vsub.f32 %v2864_v11, %v768_v50  ;;  %v799_v53 = vsub.f32 %v410_v13, %v765_v51  ;;  %v3602_v48 = vld [vmem:[%s4278_s3] sm:$0xff] }
 0x17d   :  { %v3527_v54 = vpop.eup %3185  ;;  %3195 = vpow2.f32 %v817_v49  ;;  %2913 = vmatprep.mubr.msk.f32.mxu0 %vm743_vm2, %v3602_v48  ;;  %2920 = vmatprep.mubr.msk.f32.mxu1 %vm743_vm2, %v3602_v48 }
 0x17e   :  { %v823_v55 = vmul.f32 1.442695, %v800_v52  ;;  %v821_v56 = vmul.f32 1.442695, %v799_v53  ;;  %v844_v57 = vsel %vm747_vm1, %v3527_v54, 0.0  ;;  %v3531_v58 = vpop.eup %3187 }
 0x17f   :  { %v774_v59 = vpop.xlane.xlu1 %773  ;;  %v771_v60 = vpop.xlane.xlu0 %770  ;;  %845 = vadd.xlane.f32.xlu1 %v844_v57  ;;  %v850_v2 = vsel %vm747_vm1, %v3531_v58, 0.0 }
 0x180   :  { %3197 = vpow2.f32 %v823_v55  ;;  %v802_v61 = vsub.f32 %v3495_v16, %v774_v59  ;;  %v801_v62 = vsub.f32 %v3497_v17, %v771_v60 }
 0x181   :  { %v3535_v63 = vpop.eup %3189  ;;  %3199 = vpow2.f32 %v821_v56 }
 0x182   :  { %v827_v0 = vmul.f32 1.442695, %v802_v61  ;;  %v825_v1 = vmul.f32 1.442695, %v801_v62  ;;  %v841_v3 = vsel %vm743_vm2, %v3535_v63, 0.0  ;;  %v3541_v4 = vpop.eup %3191 }
 0x183   :  { %v780_v5 = vpop.xlane.xlu1 %779  ;;  %v777_v6 = vpop.xlane.xlu0 %776  ;;  %851 = vadd.xlane.f32.xlu1 %v850_v2  ;;  %842 = vadd.xlane.f32.xlu0 %v841_v3  ;;  %v847_v12 = vsel %vm743_vm2, %v3541_v4, 0.0 }
 0x184   :  { %3201 = vpow2.f32 %v827_v0  ;;  %v804_v7 = vsub.f32 %v3501_v19, %v780_v5  ;;  %v803_v8 = vsub.f32 %v3505_v21, %v777_v6 }
 0x185   :  { %3203 = vpow2.f32 %v825_v1 }
 0x186   :  { %v3545_v9 = vpop.eup %3193  ;;  %v831_v10 = vmul.f32 1.442695, %v804_v7  ;;  %v829_v11 = vmul.f32 1.442695, %v803_v8 }
 0x187   :  { %v3549_v13 = vpop.eup %3195  ;;  %v786_v14 = vpop.xlane.xlu1 %785  ;;  %v856_v15 = vsel %vm747_vm1, %v3545_v9, 0.0  ;;  %848 = vadd.xlane.f32.xlu0 %v847_v12 }
 0x188   :  { %v783_v16 = vpop.xlane.xlu0 %782  ;;  %3205 = vpow2.f32 %v831_v10  ;;  %v806_v17 = vsub.f32 %v3511_v24, %v786_v14  ;;  %857 = vadd.xlane.f32.xlu1 %v856_v15  ;;  %v853_v22 = vsel %vm743_vm2, %v3549_v13, 0.0 }
 0x189   :  { %v805_v18 = vsub.f32 %v3513_v25, %v783_v16  ;;  %3207 = vpow2.f32 %v829_v11 }
 0x18a   :  { %v3555_v19 = vpop.eup %3197  ;;  %v835_v20 = vmul.f32 1.442695, %v806_v17 }
 0x18b   :  { %v833_v21 = vmul.f32 1.442695, %v805_v18  ;;  %v3559_v23 = vpop.eup %3199  ;;  %v792_v26 = vpop.xlane.xlu1 %791  ;;  %v862_v28 = vsel %vm747_vm1, %v3555_v19, 0.0  ;;  %854 = vadd.xlane.f32.xlu0 %v853_v22 }
 0x18c   :  { %v789_v30 = vpop.xlane.xlu0 %788  ;;  %3209 = vpow2.f32 %v835_v20  ;;  %v808_v24 = vsub.f32 %v3517_v27, %v792_v26  ;;  %863 = vadd.xlane.f32.xlu1 %v862_v28  ;;  %v859_v34 = vsel %vm743_vm2, %v3559_v23, 0.0 }
 0x18d   :  { %v807_v25 = vsub.f32 %v3521_v29, %v789_v30  ;;  %3211 = vpow2.f32 %v833_v21 }
 0x18e   :  { %v3565_v31 = vpop.eup %3201  ;;  %v839_v32 = vmul.f32 1.442695, %v808_v24 }
 0x18f   :  { %v837_v33 = vmul.f32 1.442695, %v807_v25  ;;  %v3569_v35 = vpop.eup %3203  ;;  %v868_v36 = vsel %vm747_vm1, %v3565_v31, 0.0  ;;  %860 = vadd.xlane.f32.xlu0 %v859_v34 }
 0x190   :  { %3213 = vpow2.f32 %v839_v32  ;;  %869 = vadd.xlane.f32.xlu1 %v868_v36  ;;  %v865_v29 = vsel %vm743_vm2, %v3569_v35, 0.0 }
 0x191   :  { %3215 = vpow2.f32 %v837_v33 }
 0x192   :  { %v3573_v27 = vpop.eup %3205 }
 0x193   :  { %v3577_v37 = vpop.eup %3207  ;;  %v874_v38 = vsel %vm747_vm1, %v3573_v27, 0.0  ;;  %866 = vadd.xlane.f32.xlu0 %v865_v29 }
 0x194   :  { %875 = vadd.xlane.f32.xlu1 %v874_v38  ;;  %v871_v40 = vsel %vm743_vm2, %v3577_v37, 0.0 }
 0x196   :  { %v3581_v39 = vpop.eup %3209 }
 0x197   :  { %v3585_v41 = vpop.eup %3211  ;;  %v880_v42 = vsel %vm747_vm1, %v3581_v39, 0.0  ;;  %872 = vadd.xlane.f32.xlu0 %v871_v40 }
 0x198   :  { %881 = vadd.xlane.f32.xlu1 %v880_v42  ;;  %v877_v44 = vsel %vm743_vm2, %v3585_v41, 0.0 }
 0x19a   :  { %v3589_v43 = vpop.eup %3213 }
 0x19b   :  { %v3593_v45 = vpop.eup %3215  ;;  %v886_v46 = vsel %vm747_vm1, %v3589_v43, 0.0  ;;  %878 = vadd.xlane.f32.xlu0 %v877_v44 }
 0x19c   :  { %887 = vadd.xlane.f32.xlu1 %v886_v46  ;;  %v883_v47 = vsel %vm743_vm2, %v3593_v45, 0.0 }
 0x19f   :  { %884 = vadd.xlane.f32.xlu0 %v883_v47 }
 0x20c   :  { %v846_v49 = vpop.xlane.xlu1 %845 }
 0x20d   :  { %3217 = vrcp.f32 %v846_v49 }
 0x210   :  { %v852_v50 = vpop.xlane.xlu1 %851  ;;  %v843_v51 = vpop.xlane.xlu0 %842 }
 0x211   :  { %3219 = vrcp.f32 %v852_v50 }
 0x212   :  { %3221 = vrcp.f32 %v843_v51 }
 0x214   :  { %v849_v52 = vpop.xlane.xlu0 %848 }
 0x215   :  { %v858_v53 = vpop.xlane.xlu1 %857  ;;  %3223 = vrcp.f32 %v849_v52 }
 0x216   :  { %3225 = vrcp.f32 %v858_v53 }
 0x217   :  { %v3218_v55 = vpop.eup %3217 }
 0x218   :  { %v855_v56 = vpop.xlane.xlu0 %854  ;;  %v3609_v60 = vmul.f32 %v3218_v55, %v3527_v54 }
 0x219   :  { %v864_v57 = vpop.xlane.xlu1 %863  ;;  %3227 = vrcp.f32 %v855_v56 }
 0x21a   :  { %3229 = vrcp.f32 %v864_v57  ;;  %v922_v6 = vsel %vm747_vm1, %v3609_v60, 0.0 }
 0x21b   :  { %v3220_v59 = vpop.eup %3219 }
 0x21c   :  { %v3222_v61 = vpop.eup %3221  ;;  %v861_v62 = vpop.xlane.xlu0 %860  ;;  %v3615_v2 = vmul.f32 %v3220_v59, %v3531_v58 }
 0x21d   :  { %v870_v0 = vpop.xlane.xlu1 %869  ;;  %3231 = vrcp.f32 %v861_v62  ;;  %v3612_v1 = vmul.f32 %v3222_v61, %v3535_v63 }
 0x21e   :  { %3233 = vrcp.f32 %v870_v0  ;;  %v931_v58 = vsel %vm747_vm1, %v3615_v2, 0.0 }
 0x21f   :  { %v3224_v3 = vpop.eup %3223  ;;  %v921_v5 = vsel %vm743_vm2, %v3612_v1, 0.0 }
 0x220   :  { %v3226_v54 = vpop.eup %3225  ;;  %v867_v7 = vpop.xlane.xlu0 %866  ;;  %v923_v8 = vadd.f32 %v922_v6, %v921_v5  ;;  %v3622_v10 = vmul.f32 %v3224_v3, %v3541_v4 }
 0x221   :  { %v876_v11 = vpop.xlane.xlu1 %875  ;;  %3235 = vrcp.f32 %v867_v7  ;;  %v3629_v14 = vmul.f32 %v3226_v54, %v3545_v9 }
 0x222   :  { %3237 = vrcp.f32 %v876_v11  ;;  %v924_v63 = vrot.slane %v923_v8, 4  ;;  %v930_v12 = vsel %vm743_vm2, %v3622_v10, 0.0 }
 0x223   :  { %v3228_v15 = vpop.eup %3227  ;;  %v932_v16 = vadd.f32 %v931_v58, %v930_v12  ;;  %v940_v30 = vsel %vm747_vm1, %v3629_v14, 0.0 }
 0x224   :  { %v3230_v17 = vpop.eup %3229  ;;  %v873_v18 = vpop.xlane.xlu0 %872  ;;  %v925_v20 = vadd.f32 %v924_v63, %v923_v8  ;;  %v3632_v4 = vmul.f32 %v3228_v15, %v3549_v13 }
 0x225   :  { %v882_v21 = vpop.xlane.xlu1 %881  ;;  %3239 = vrcp.f32 %v873_v18  ;;  %v933_v22 = vrot.slane %v932_v16, 4  ;;  %v3635_v26 = vmul.f32 %v3230_v17, %v3555_v19 }
 0x226   :  { %3241 = vrcp.f32 %v882_v21  ;;  %v926_v28 = vrot.slane %v925_v20, 2  ;;  %v939_v9 = vsel %vm743_vm2, %v3632_v4, 0.0 }
 0x227   :  { %v3232_v24 = vpop.eup %3231  ;;  %v934_v25 = vadd.f32 %v933_v22, %v932_v16  ;;  %v941_v32 = vadd.f32 %v940_v30, %v939_v9  ;;  %v949_v40 = vsel %vm747_vm1, %v3635_v26, 0.0 }
 0x228   :  { %v3234_v33 = vpop.eup %3233  ;;  %v879_v13 = vpop.xlane.xlu0 %878  ;;  %v927_v34 = vadd.f32 %v926_v28, %v925_v20  ;;  %v3642_v36 = vmul.f32 %v3232_v24, %v3559_v23 }
 0x229   :  { %v888_v29 = vpop.xlane.xlu1 %887  ;;  %3243 = vrcp.f32 %v879_v13  ;;  %v935_v19 = vrot.slane %v934_v25, 2  ;;  %v942_v38 = vrot.slane %v941_v32, 4  ;;  %v3649_v46 = vmul.f32 %v3234_v33, %v3565_v31 }
 0x22a   :  { %3245 = vrcp.f32 %v888_v29  ;;  %v928_v42 = vrot.slane %v927_v34, 1  ;;  %v948_v44 = vsel %vm743_vm2, %v3642_v36, 0.0 }
 0x22b   :  { %v3236_v47 = vpop.eup %3235  ;;  %v936_v49 = vadd.f32 %v935_v19, %v934_v25  ;;  %v943_v50 = vadd.f32 %v942_v38, %v941_v32  ;;  %v950_v23 = vadd.f32 %v949_v40, %v948_v44  ;;  %v958_v31 = vsel %vm747_vm1, %v3649_v46, 0.0 }
 0x22c   :  { %v3238_v51 = vpop.eup %3237  ;;  %v885_v52 = vpop.xlane.xlu0 %884  ;;  %v929_v53 = vadd.f32 %v928_v42, %v927_v34  ;;  %v3652_v55 = vmul.f32 %v3236_v47, %v3569_v35 }
 0x22d   :  { %3247 = vrcp.f32 %v885_v52  ;;  %v937_v56 = vrot.slane %v936_v49, 1  ;;  %v944_v57 = vrot.slane %v943_v50, 2  ;;  %v951_v59 = vrot.slane %v950_v23, 4 }
 0x22e   :  { %v993_v61 = vadd.f32 1e-09, %v929_v53  ;;  %v957_v62 = vsel %vm743_vm2, %v3652_v55, 0.0  ;;  %v3659_v0 = vmul.f32 %v3238_v51, %v3573_v27 }
 0x22f   :  { %v3240_v3 = vpop.eup %3239  ;;  %v938_v5 = vadd.f32 %v937_v56, %v936_v49  ;;  %v945_v6 = vadd.f32 %v944_v57, %v943_v50  ;;  %v952_v54 = vadd.f32 %v951_v59, %v950_v23  ;;  %v959_v35 = vadd.f32 %v958_v31, %v957_v62 }
 0x230   :  { %v3242_v7 = vpop.eup %3241  ;;  %3249 = vrcp.f32 %v993_v61  ;;  %v3662_v8 = vmul.f32 %v3240_v3, %v3577_v37  ;;  %v967_v27 = vsel %vm747_vm1, %v3659_v0, 0.0 }
 0x231   :  { %v994_v11 = vadd.f32 1e-09, %v938_v5  ;;  %v946_v58 = vrot.slane %v945_v6, 1  ;;  %v953_v63 = vrot.slane %v952_v54, 2  ;;  %v960_v12 = vrot.slane %v959_v35, 4 }
 0x232   :  { %v966_v15 = vsel %vm743_vm2, %v3662_v8, 0.0  ;;  %v3669_v16 = vmul.f32 %v3242_v7, %v3581_v39 }
 0x233   :  { %v3244_v17 = vpop.eup %3243  ;;  %3251 = vrcp.f32 %v994_v11  ;;  %v947_v18 = vadd.f32 %v946_v58, %v945_v6  ;;  %v954_v20 = vadd.f32 %v953_v63, %v952_v54  ;;  %v961_v21 = vadd.f32 %v960_v12, %v959_v35  ;;  %v3704_v6 = vld [vmem:[%s4278_s3 + $0x8] sm:$0xf] }
 0x234   :  { %v3246_v37 = vpop.eup %3245  ;;  %v968_v22 = vadd.f32 %v967_v27, %v966_v15  ;;  %v3672_v28 = vmul.f32 %v3244_v17, %v3585_v41  ;;  %v976_v39 = vsel %vm747_vm1, %v3669_v16, 0.0 }
 0x235   :  { %v995_v9 = vadd.f32 1e-09, %v947_v18  ;;  %v955_v30 = vrot.slane %v954_v20, 1  ;;  %v962_v24 = vrot.slane %v961_v21, 2  ;;  %v3679_v33 = vmul.f32 %v3246_v37, %v3589_v43 }
 0x236   :  { %v969_v25 = vrot.slane %v968_v22, 4  ;;  %v975_v32 = vsel %vm743_vm2, %v3672_v28, 0.0 }
 0x237   :  { %v3248_v13 = vpop.eup %3247  ;;  %3253 = vrcp.f32 %v995_v9  ;;  %v956_v34 = vadd.f32 %v955_v30, %v954_v20  ;;  %v963_v29 = vadd.f32 %v962_v24, %v961_v21  ;;  %v977_v19 = vadd.f32 %v976_v39, %v975_v32 }
 0x238   :  { %v970_v41 = vadd.f32 %v969_v25, %v968_v22  ;;  %v3682_v38 = vmul.f32 %v3248_v13, %v3593_v45  ;;  %v985_v43 = vsel %vm747_vm1, %v3679_v33, 0.0 }
 0x239   :  { %v996_v40 = vadd.f32 1e-09, %v956_v34  ;;  %v964_v42 = vrot.slane %v963_v29, 1  ;;  %v978_v44 = vrot.slane %v977_v19, 4  ;;  %v74_v34 = vld [vmem:[%s4279_s2] sm:$0xff] }
 0x23a   :  { %v3250_v47 = vpop.eup %3249  ;;  %v971_v49 = vrot.slane %v970_v41, 2  ;;  %v984_v50 = vsel %vm743_vm2, %v3682_v38, 0.0 }
 0x23b   :  { %v1009_v23 = vmul.f32 %v3250_v47, %v3612_v1  ;;  %v1010_v51 = vmul.f32 %v3250_v47, %v3609_v60  ;;  %3255 = vrcp.f32 %v996_v40  ;;  %v965_v52 = vadd.f32 %v964_v42, %v963_v29  ;;  %v75_v29 = vld [vmem:[%s4279_s2 + $0x8] sm:$0xf] }
 0x23c   :  { %v972_v53 = vadd.f32 %v971_v49, %v970_v41  ;;  %v979_v56 = vadd.f32 %v978_v44, %v977_v19  ;;  %v986_v57 = vadd.f32 %v985_v43, %v984_v50  ;;  %v3133_v41 = vpack.c.bf16 %v75_v29, %v74_v34  ;;  %v78_v44 = vld [vmem:[%s4279_s2 + $0x20] sm:$0xff]  ;;  %v79_v47 = vld [vmem:[%s4279_s2 + $0x28] sm:$0xf]  ;;  %v80_v50 = vld [vmem:[%s4279_s2 + $0x30] sm:$0xff] }
 0x23d   :  { %v3252_v59 = vpop.eup %3251  ;;  %v3085_v61 = vpack.c.bf16 %v1010_v51, %v1009_v23  ;;  %v997_v62 = vadd.f32 1e-09, %v965_v52  ;;  %v3145_v49 = vpack.c.bf16 %v79_v47, %v78_v44  ;;  %v81_v43 = vld [vmem:[%s4279_s2 + $0x38] sm:$0xf]  ;;  %v3286_v51 = vmov 0  }
 0x23e   :  { %v1011_v31 = vmul.f32 %v3252_v59, %v3622_v10  ;;  %v1012_v1 = vmul.f32 %v3252_v59, %v3615_v2  ;;  %v973_v3 = vrot.slane %v972_v53, 1  ;;  %v980_v60 = vrot.slane %v979_v56, 2  ;;  %3183 = vset.pattern.permute.xlu0 %v3286_v51  ;;  %3184 = vset.pattern.permute.xlu1 %v3286_v51  ;;  %v93_v52 = vld [vmem:[%s4280_s4 + $0x8] sm:$0xf]  ;;  %v3905_v29 = vld [vmem:[%s4277_s0 + $0x18] sm:$0xf] }
 0x23f   :  { %3087 = vmatprep.subr.msk.bf16.mxu0 %vm3691_vm5, %v3085_v61  ;;  %3257 = vrcp.f32 %v997_v62  ;;  %v987_v5 = vrot.slane %v986_v57, 4  ;;  %v3151_v23 = vpack.c.bf16 %v81_v43, %v80_v50  ;;  %1663 = vperm.xlu0 %3183, %v93_v52   ;;  %v3929_v47 = vld [vmem:[%s4277_s0 + $0x28] sm:$0xf] }
 0x240   :  { %3090 = vmatpush3.bf16.msk.msra.mxu0 %vm3691_vm5, %v3085_v61  ;;  %v3091_v54 = vpack.c.bf16 %v1012_v1, %v1011_v31  ;;  %v974_v35 = vadd.f32 %v973_v3, %v972_v53  ;;  %v981_v10 = vadd.f32 %v980_v60, %v979_v56  ;;  %v92_v53 = vld [vmem:[%s4280_s4] sm:$0xff]  ;;  %v84_v31 = vld [vmem:[%s4279_s2 + $0x50] sm:$0xff]  ;;  %v85_v1 = vld [vmem:[%s4279_s2 + $0x58] sm:$0xf] }
 0x241   :  { %v3254_v7 = vpop.eup %3253  ;;  %v988_v2 = vadd.f32 %v987_v5, %v986_v57  ;;  %1658 = vperm.xlu1 %3184, %v92_v53   ;;  %v82_v56 = vld [vmem:[%s4279_s2 + $0x40] sm:$0xff]  ;;  %v83_v57 = vld [vmem:[%s4279_s2 + $0x48] sm:$0xf]  ;;  %v3163_v5 = vpack.c.bf16 %v85_v1, %v84_v31  ;;  %v3941_v53 = vld [vmem:[%s4277_s0 + $0x38] sm:$0xf] }
 0x242   :  { %3093 = vmatprep.subr.msk.bf16.mxu1 %vm3691_vm5, %v3091_v54  ;;  %v1013_v11 = vmul.f32 %v3254_v7, %v3632_v4  ;;  %v1014_v58 = vmul.f32 %v3254_v7, %v3629_v14  ;;  %v998_v63 = vadd.f32 1e-09, %v974_v35  ;;  %v982_v12 = vrot.slane %v981_v10, 1  ;;  %v3959_v31 = vld [vmem:[%s4277_s0 + $0x20] sm:$0xff] }
 0x243   :  { %2914 = vmatmul.mubr.msk.f32.vlgmr.msra.gmra.mrb[8].mxu0 %vm743_vm2, %v3704_v6  ;;  %3096 = vmatpush3.bf16.msk.msra.mxu1 %vm3691_vm5, %v3091_v54  ;;  %v989_v15 = vrot.slane %v988_v2, 2  ;;  %v3157_v62 = vpack.c.bf16 %v83_v57, %v82_v56  ;;  %v87_v54 = vld [vmem:[%s4279_s2 + $0x68] sm:$0xf] }
 0x244   :  { %v3097_v27 = vpack.c.bf16 %v1014_v58, %v1013_v11  ;;  %2927 = vmatprep.mubr.msk.f32.mxu0 %vm743_vm2, %v3602_v48  ;;  %3259 = vrcp.f32 %v998_v63  ;;  %v983_v17 = vadd.f32 %v982_v12, %v981_v10  ;;  %v89_v11 = vld [vmem:[%s4279_s2 + $0x78] sm:$0xf]  ;;  %v3949_v57 = vld [vmem:[%s4277_s0 + $0x48] sm:$0xf] }
 0x245   :  { %v3256_v18 = vpop.eup %3255  ;;  %v990_v20 = vadd.f32 %v989_v15, %v988_v2  ;;  %v88_v2 = vld [vmem:[%s4279_s2 + $0x70] sm:$0xff] }
 0x246   :  { %2921 = vmatmul.mubr.msk.f32.vlgmr.msra.gmra.mrb[8].mxu1 %vm743_vm2, %v3704_v6  ;;  %3099 = vmatprep.subr.msk.bf16.mxu0 %vm3691_vm5, %v3097_v27  ;;  %v1015_v14 = vmul.f32 %v3256_v18, %v3642_v36  ;;  %v1016_v4 = vmul.f32 %v3256_v18, %v3635_v26  ;;  %v999_v21 = vadd.f32 1e-09, %v983_v17  ;;  %v3175_v12 = vpack.c.bf16 %v89_v11, %v88_v2 }
 0x247   :  { %3102 = vmatpush3.bf16.msk.msra.mxu0 %vm3691_vm5, %v3097_v27  ;;  %2934 = vmatprep.mubr.msk.f32.mxu1 %vm743_vm2, %v3602_v48  ;;  %v991_v37 = vrot.slane %v990_v20, 1 }
 0x248   :  { %v3103_v22 = vpack.c.bf16 %v1016_v4, %v1015_v14  ;;  %3261 = vrcp.f32 %v999_v21 }
 0x249   :  { %v3258_v9 = vpop.eup %3257  ;;  %v992_v30 = vadd.f32 %v991_v37, %v990_v20 }
 0x24a   :  { %2928 = vmatmul.mubr.msk.f32.vlgmr.msra.gmra.mrb[10].mxu0 %vm743_vm2, %v3704_v6  ;;  %3105 = vmatprep.subr.msk.bf16.mxu1 %vm3691_vm5, %v3103_v22  ;;  %v1017_v26 = vmul.f32 %v3258_v9, %v3652_v55  ;;  %v1018_v36 = vmul.f32 %v3258_v9, %v3649_v46 }
 0x24b   :  { %3108 = vmatpush3.bf16.msk.msra.mxu1 %vm3691_vm5, %v3103_v22  ;;  %2941 = vmatprep.mubr.msk.f32.mxu0 %vm743_vm2, %v3602_v48  ;;  %v1000_v24 = vadd.f32 1e-09, %v992_v30 }
 0x24c   :  { %v3109_v25 = vpack.c.bf16 %v1018_v36, %v1017_v26 }
 0x24d   :  { %3263 = vrcp.f32 %v1000_v24  ;;  %v3885_v24 = vld [vmem:[%s4277_s0 + $0x8] sm:$0xf] }
 0x24e   :  { %v3260_v32 = vpop.eup %3259  ;;  %2935 = vmatmul.mubr.msk.f32.vlgmr.msra.gmra.mrb[10].mxu1 %vm743_vm2, %v3704_v6  ;;  %3111 = vmatprep.subr.msk.bf16.mxu0 %vm3691_vm5, %v3109_v25 }
 0x24f   :  { %3114 = vmatpush3.bf16.msk.msra.mxu0 %vm3691_vm5, %v3109_v25  ;;  %v1019_v46 = vmul.f32 %v3260_v32, %v3662_v8  ;;  %v1020_v55 = vmul.f32 %v3260_v32, %v3659_v0  ;;  %2948 = vmatprep.mubr.msk.f32.mxu1 %vm743_vm2, %v3602_v48 }
 0x251   :  { %v3115_v39 = vpack.c.bf16 %v1020_v55, %v1019_v46 }
 0x252   :  { %v3262_v13 = vpop.eup %3261  ;;  %2942 = vmatmul.mubr.msk.f32.vlgmr.msra.gmra.mrb[12].mxu0 %vm743_vm2, %v3704_v6 }
 0x253   :  { %3117 = vmatprep.subr.msk.bf16.mxu1 %vm3691_vm5, %v3115_v39  ;;  %v1021_v0 = vmul.f32 %v3262_v13, %v3672_v28  ;;  %v1022_v8 = vmul.f32 %v3262_v13, %v3669_v16  ;;  %2955 = vmatprep.mubr.msk.f32.mxu0 %vm743_vm2, %v3602_v48  ;;  %v3897_v13 = vld [vmem:[%s4277_s0] sm:$0xff] }
 0x254   :  { %3120 = vmatpush3.bf16.msk.msra.mxu1 %vm3691_vm5, %v3115_v39 }
 0x255   :  { %v3121_v19 = vpack.c.bf16 %v1022_v8, %v1021_v0 }
 0x257   :  { %v3264_v40 = vpop.eup %3263  ;;  %2949 = vmatmul.mubr.msk.f32.vlgmr.msra.gmra.mrb[12].mxu1 %vm743_vm2, %v3704_v6  ;;  %3123 = vmatprep.subr.msk.bf16.mxu0 %vm3691_vm5, %v3121_v19 }
 0x258   :  { %3126 = vmatpush3.bf16.msk.msra.mxu0 %vm3691_vm5, %v3121_v19  ;;  %v1023_v16 = vmul.f32 %v3264_v40, %v3682_v38  ;;  %v1024_v28 = vmul.f32 %v3264_v40, %v3679_v33  ;;  %2962 = vmatprep.mubr.msk.f32.mxu1 %vm743_vm2, %v3602_v48  ;;  %v76_v48 = vld [vmem:[%s4279_s2 + $0x10] sm:$0xff]  ;;  %v77_v33 = vld [vmem:[%s4279_s2 + $0x18] sm:$0xf] }
 0x259   :  { %3135 = vmatprep.subr.msk.bf16.mxu0 %vm3691_vm5, %v3133_v41  ;;  %v3139_v38 = vpack.c.bf16 %v77_v33, %v76_v48 }
 0x25a   :  { %v3127_v42 = vpack.c.bf16 %v1024_v28, %v1023_v16  ;;  %v3918_v28 = vld [vmem:[%s4277_s0 + $0x10] sm:$0xff] }
 0x25b   :  { %2956 = vmatmul.mubr.msk.f32.vlgmr.msra.gmra.mrb[14].mxu0 %vm743_vm2, %v3704_v6 }
 0x25c   :  { %3129 = vmatprep.subr.msk.bf16.mxu1 %vm3691_vm5, %v3127_v42  ;;  %3138 = vmatpush3.bf16.msk.msra.mxu0 %vm3691_vm5, %v3133_v41 }
 0x25d   :  { %3132 = vmatpush3.bf16.msk.msra.mxu1 %vm3691_vm5, %v3127_v42  ;;  %3147 = vmatprep.subr.msk.bf16.mxu0 %vm3691_vm5, %v3145_v49 }
 0x25e   :  { %3141 = vmatprep.subr.msk.bf16.mxu1 %vm3691_vm5, %v3139_v38 }
 0x260   :  { %2963 = vmatmul.mubr.msk.f32.vlgmr.msra.gmra.mrb[14].mxu1 %vm743_vm2, %v3704_v6  ;;  %v86_v6 = vld [vmem:[%s4279_s2 + $0x60] sm:$0xff] }
 0x261   :  { %3144 = vmatpush3.bf16.msk.msra.mxu1 %vm3691_vm5, %v3139_v38  ;;  %v3169_v7 = vpack.c.bf16 %v87_v54, %v86_v6  ;;  %v3971_v54 = vld [vmem:[%s4277_s0 + $0x58] sm:$0xf] }
 0x262   :  { %3153 = vmatprep.subr.msk.bf16.mxu1 %vm3691_vm5, %v3151_v23 }
 0x2be   :  { %v3876_v37 = vpop.permute.xlu0 %1663 }
 0x2c0   :  { %v3878_v22 = vpop.permute.xlu1 %1658 }
 0x316   :  { %v2915_v59 = vpop.f32.mrb[8].mxu0 }
 0x317   :  { %v1101_v61 = vpop.f32.mrb[9].mxu0 }
 0x318   :  { %2969 = vmatprep.mubr.msk.f32.mxu0 %vm743_vm2, %v1101_v61 }
 0x319   :  { %2970 = vmatmul.mubr.msk.f32.vlgmr.msra.gmra.mrb[16].mxu0 %vm743_vm2, %v2915_v59  ;;  %v2922_v3 = vpop.f32.mrb[8].mxu1 }
 0x31a   :  { %v1179_v60 = vpop.f32.mrb[9].mxu1  ;;  %3150 = vmatpush3.bf16.msk.msra.mxu0 %vm3691_vm5, %v3145_v49 }
 0x31b   :  { %2976 = vmatprep.mubr.msk.f32.mxu1 %vm743_vm2, %v1179_v60  ;;  %3159 = vmatprep.subr.msk.bf16.mxu0 %vm3691_vm5, %v3157_v62 }
 0x31c   :  { %2977 = vmatmul.mubr.msk.f32.vlgmr.msra.gmra.mrb[16].mxu1 %vm743_vm2, %v2922_v3 }
 0x31d   :  { %v2929_v35 = vpop.f32.mrb[10].mxu0  ;;  %3156 = vmatpush3.bf16.msk.msra.mxu1 %vm3691_vm5, %v3151_v23 }
 0x31e   :  { %v1257_v10 = vpop.f32.mrb[11].mxu0  ;;  %3165 = vmatprep.subr.msk.bf16.mxu1 %vm3691_vm5, %v3163_v5 }
 0x31f   :  { %2983 = vmatprep.mubr.msk.f32.mxu0 %vm743_vm2, %v1257_v10 }
 0x320   :  { %2984 = vmatmul.mubr.msk.f32.vlgmr.msra.gmra.mrb[18].mxu0 %vm743_vm2, %v2929_v35 }
 0x321   :  { %v2936_v58 = vpop.f32.mrb[10].mxu1  ;;  %3162 = vmatpush3.bf16.msk.msra.mxu0 %vm3691_vm5, %v3157_v62 }
 0x322   :  { %v1335_v63 = vpop.f32.mrb[11].mxu1  ;;  %3171 = vmatprep.subr.msk.bf16.mxu0 %vm3691_vm5, %v3169_v7 }
 0x323   :  { %2990 = vmatprep.mubr.msk.f32.mxu1 %vm743_vm2, %v1335_v63 }
 0x324   :  { %2991 = vmatmul.mubr.msk.f32.vlgmr.msra.gmra.mrb[18].mxu1 %vm743_vm2, %v2936_v58 }
 0x325   :  { %v2943_v15 = vpop.f32.mrb[12].mxu0  ;;  %3168 = vmatpush3.bf16.msk.msra.mxu1 %vm3691_vm5, %v3163_v5 }
 0x326   :  { %v1413_v27 = vpop.f32.mrb[13].mxu0  ;;  %3177 = vmatprep.subr.msk.bf16.mxu1 %vm3691_vm5, %v3175_v12 }
 0x327   :  { %2997 = vmatprep.mubr.msk.f32.mxu0 %vm743_vm2, %v1413_v27  ;;  %v3993_v27 = vld [vmem:[%s4277_s0 + $0x68] sm:$0xf] }
 0x328   :  { %2998 = vmatmul.mubr.msk.f32.vlgmr.msra.gmra.mrb[20].mxu0 %vm743_vm2, %v2943_v15 }
 0x329   :  { %3174 = vmatpush3.bf16.msk.msra.mxu0 %vm3691_vm5, %v3169_v7 }
 0x32a   :  { %v2950_v17 = vpop.f32.mrb[12].mxu1 }
 0x32b   :  { %v1491_v18 = vpop.f32.mrb[13].mxu1 }
 0x32c   :  { %3004 = vmatprep.mubr.msk.f32.mxu1 %vm743_vm2, %v1491_v18 }
 0x32d   :  { %3005 = vmatmul.mubr.msk.f32.vlgmr.msra.gmra.mrb[20].mxu1 %vm743_vm2, %v2950_v17 }
 0x32e   :  { %v2957_v20 = vpop.f32.mrb[14].mxu0  ;;  %3180 = vmatpush3.bf16.msk.msra.mxu1 %vm3691_vm5, %v3175_v12  ;;  %v3985_v12 = vld [vmem:[%s4277_s0 + $0x30] sm:$0xff] }
 0x32f   :  { %v1569_v14 = vpop.f32.mrb[15].mxu0 }
 0x330   :  { %3011 = vmatprep.mubr.msk.f32.mxu0 %vm743_vm2, %v1569_v14 }
 0x331   :  { %3012 = vmatmul.mubr.msk.f32.vlgmr.msra.gmra.mrb[22].mxu0 %vm743_vm2, %v2957_v20 }
 0x333   :  { %v2964_v4 = vpop.f32.mrb[14].mxu1 }
 0x334   :  { %v1647_v21 = vpop.f32.mrb[15].mxu1 }
 0x335   :  { %3018 = vmatprep.mubr.msk.f32.mxu1 %vm743_vm2, %v1647_v21  ;;  %v4006_v21 = vld [vmem:[%s4277_s0 + $0x40] sm:$0xff] }
 0x336   :  { %3019 = vmatmul.mubr.msk.f32.vlgmr.msra.gmra.mrb[22].mxu1 %vm743_vm2, %v2964_v4 }
 0x3ec   :  { %v2971_v9 = vpop.f32.mrb[16].mxu0 }
 0x3ed   :  { %v1741_v30 = vpop.f32.mrb[17].mxu0  ;;  %v1747_v45 = vadd.f32 %v2971_v9, %v3876_v37 }
 0x3ee   :  { %v1742_v26 = vadd.f32 %v1741_v30, %v3878_v22 }
 0x3ef   :  { %v2978_v36 = vpop.f32.mrb[16].mxu1  ;;  %v3888_v25 = vsub.f32 %v3885_v24, %v1747_v45 }
 0x3f0   :  { %v1831_v32 = vadd.f32 %v2978_v36, %v3876_v37  ;;  %v1825_v46 = vpop.f32.mrb[17].mxu1  ;;  %v3900_v34 = vsub.f32 %v3897_v13, %v1742_v26  ;;  %v4015_v26 = vld [vmem:[%s4277_s0 + $0x78] sm:$0xf] }
 0x3f1   :  { %v1826_v55 = vadd.f32 %v1825_v46, %v3878_v22  ;;  %v2358_v39 = vsel %vm2357_vm6, %v3888_v25, 0.0 }
 0x3f2   :  { %2359 = vadd.xlane.f32.xlu1 %v2358_v39  ;;  %v3908_v0 = vsub.f32 %v3905_v29, %v1831_v32  ;;  %v2354_v16 = vsel %vm94_vm0, %v3900_v34, 0.0 }
 0x3f3   :  { %v2985_v8 = vpop.f32.mrb[18].mxu0  ;;  %v3921_v42 = vsub.f32 %v3918_v28, %v1826_v55 }
 0x3f4   :  { %v1909_v19 = vpop.f32.mrb[19].mxu0  ;;  %v2364_v41 = vsel %vm2357_vm6, %v3908_v0, 0.0  ;;  %v1915_v40 = vadd.f32 %v2985_v8, %v3876_v37 }
 0x3f5   :  { %2365 = vadd.xlane.f32.xlu0 %v2364_v41  ;;  %v2361_v44 = vsel %vm94_vm0, %v3921_v42, 0.0  ;;  %v1910_v43 = vadd.f32 %v1909_v19, %v3878_v22  ;;  %v4039_v41 = vld [vmem:[%s4277_s0 + $0x60] sm:$0xff] }
 0x3f6   :  { %2355 = vadd.xlane.f32.xlu1 %v2354_v16  ;;  %v3932_v49 = vsub.f32 %v3929_v47, %v1915_v40 }
 0x3f7   :  { %v2992_v48 = vpop.f32.mrb[18].mxu1  ;;  %v3962_v1 = vsub.f32 %v3959_v31, %v1910_v43 }
 0x3f8   :  { %v1993_v33 = vpop.f32.mrb[19].mxu1  ;;  %v1999_v38 = vadd.f32 %v2992_v48, %v3876_v37  ;;  %v2370_v52 = vsel %vm2357_vm6, %v3932_v49, 0.0  ;;  %v4049_v48 = vld [vmem:[%s4277_s0 + $0x70] sm:$0xff] }
 0x3f9   :  { %v1994_v3 = vadd.f32 %v1993_v33, %v3878_v22  ;;  %v2367_v7 = vsel %vm94_vm0, %v3962_v1, 0.0 }
 0x3fa   :  { %2362 = vadd.xlane.f32.xlu1 %v2361_v44  ;;  %v3944_v56 = vsub.f32 %v3941_v53, %v1999_v38 }
 0x3fb   :  { %v2999_v50 = vpop.f32.mrb[20].mxu0  ;;  %v3988_v15 = vsub.f32 %v3985_v12, %v1994_v3 }
 0x3fc   :  { %v2083_v23 = vadd.f32 %v2999_v50, %v3876_v37  ;;  %v2077_v51 = vpop.f32.mrb[21].mxu0  ;;  %v2376_v6 = vsel %vm2357_vm6, %v3944_v56, 0.0 }
 0x3fd   :  { %v2078_v2 = vadd.f32 %v2077_v51, %v3878_v22  ;;  %v2373_v4 = vsel %vm94_vm0, %v3988_v15, 0.0 }
 0x3fe   :  { %2371 = vadd.xlane.f32.xlu1 %v2370_v52  ;;  %v3952_v59 = vsub.f32 %v3949_v57, %v2083_v23 }
 0x3ff   :  { %v4009_v9 = vsub.f32 %v4006_v21, %v2078_v2 }
 0x400   :  { %v3006_v61 = vpop.f32.mrb[20].mxu1  ;;  %v2382_v62 = vsel %vm2357_vm6, %v3952_v59, 0.0 }
 0x401   :  { %v2167_v60 = vadd.f32 %v3006_v61, %v3876_v37  ;;  %v2161_v5 = vpop.f32.mrb[21].mxu1  ;;  %2383 = vadd.xlane.f32.xlu0 %v2382_v62  ;;  %v2379_v46 = vsel %vm94_vm0, %v4009_v9, 0.0 }
 0x402   :  { %2377 = vadd.xlane.f32.xlu1 %v2376_v6  ;;  %v2162_v18 = vadd.f32 %v2161_v5, %v3878_v22 }
 0x403   :  { %v3974_v35 = vsub.f32 %v3971_v54, %v2167_v60 }
 0x404   :  { %v3013_v10 = vpop.f32.mrb[22].mxu0 }
 0x405   :  { %v2251_v11 = vadd.f32 %v3013_v10, %v3876_v37  ;;  %v2245_v58 = vpop.f32.mrb[23].mxu0  ;;  %v2388_v63 = vsel %vm2357_vm6, %v3974_v35, 0.0 }
 0x406   :  { %2389 = vadd.xlane.f32.xlu0 %v2388_v63  ;;  %2368 = vadd.xlane.f32.xlu1 %v2367_v7  ;;  %v2246_v32 = vadd.f32 %v2245_v58, %v3878_v22 }
 0x407   :  { %v3996_v17 = vsub.f32 %v3993_v27, %v2251_v11 }
 0x408   :  { %v4042_v40 = vsub.f32 %v4039_v41, %v2246_v32 }
 0x409   :  { %v3020_v20 = vpop.f32.mrb[22].mxu1  ;;  %v2394_v14 = vsel %vm2357_vm6, %v3996_v17, 0.0 }
 0x40a   :  { %v2335_v30 = vadd.f32 %v3020_v20, %v3876_v37  ;;  %v2329_v45 = vpop.f32.mrb[23].mxu1  ;;  %2395 = vadd.xlane.f32.xlu0 %v2394_v14  ;;  %2374 = vadd.xlane.f32.xlu1 %v2373_v4  ;;  %v4026_v37 = vld [vmem:[%s4277_s0 + $0x50] sm:$0xff]  ;;  %v2391_v16 = vsel %vm94_vm0, %v4042_v40, 0.0 }
 0x40b   :  { %v4029_v55 = vsub.f32 %v4026_v37, %v2162_v18  ;;  %v2330_v8 = vadd.f32 %v2329_v45, %v3878_v22 }
 0x40c   :  { %v4018_v36 = vsub.f32 %v4015_v26, %v2335_v30 }
 0x40d   :  { %v2385_v19 = vsel %vm94_vm0, %v4029_v55, 0.0  ;;  %v4052_v22 = vsub.f32 %v4049_v48, %v2330_v8 }
 0x40e   :  { %v2400_v39 = vsel %vm2357_vm6, %v4018_v36, 0.0  ;;  %2380 = vadd.xlane.f32.xlu1 %v2379_v46 }
 0x40f   :  { %2401 = vadd.xlane.f32.xlu0 %v2400_v39  ;;  %v2397_v33 = vsel %vm94_vm0, %v4052_v22, 0.0 }
 0x412   :  { %2386 = vadd.xlane.f32.xlu1 %v2385_v19 }
 0x416   :  { %2392 = vadd.xlane.f32.xlu1 %v2391_v16 }
 0x41a   :  { %2398 = vadd.xlane.f32.xlu1 %v2397_v33 }
 0x47f   :  { %v2360_v38 = vpop.xlane.xlu1 %2359 }
 0x480   :  { %v2410_v52 = vsel %vm1031_vm3, %v2360_v38, 0.0 }
 0x482   :  { %v2366_v43 = vpop.xlane.xlu0 %2365 }
 0x483   :  { %v2356_v44 = vpop.xlane.xlu1 %2355  ;;  %v2411_v23 = vsel %vm1031_vm3, %v2366_v43, 0.0 }
 0x484   :  { %v2412_v62 = vadd.f32 %v2411_v23, %v2410_v52 }
 0x487   :  { %v2363_v50 = vpop.xlane.xlu1 %2362 }
 0x488   :  { %v2403_v45 = vadd.f32 %v2363_v50, %v2356_v44 }
 0x48b   :  { %v2372_v51 = vpop.xlane.xlu1 %2371 }
 0x48c   :  { %v2413_v61 = vsel %vm1031_vm3, %v2372_v51, 0.0 }
 0x48d   :  { %v2414_v5 = vadd.f32 %v2413_v61, %v2412_v62 }
 0x48e   :  { %v2384_v3 = vpop.xlane.xlu0 %2383 }
 0x48f   :  { %v2378_v60 = vpop.xlane.xlu1 %2377  ;;  %v2417_v11 = vsel %vm1031_vm3, %v2384_v3, 0.0 }
 0x490   :  { %v2415_v6 = vsel %vm1031_vm3, %v2378_v60, 0.0 }
 0x491   :  { %v2416_v10 = vadd.f32 %v2415_v6, %v2414_v5 }
 0x493   :  { %v2390_v7 = vpop.xlane.xlu0 %2389  ;;  %v2369_v2 = vpop.xlane.xlu1 %2368  ;;  %v2418_v58 = vadd.f32 %v2417_v11, %v2416_v10 }
 0x494   :  { %v2419_v63 = vsel %vm1031_vm3, %v2390_v7, 0.0  ;;  %v2404_v8 = vadd.f32 %v2403_v45, %v2369_v2 }
 0x495   :  { %v2420_v4 = vadd.f32 %v2419_v63, %v2418_v58 }
 0x497   :  { %v2396_v18 = vpop.xlane.xlu0 %2395  ;;  %v2375_v20 = vpop.xlane.xlu1 %2374 }
 0x498   :  { %v2421_v14 = vsel %vm1031_vm3, %v2396_v18, 0.0  ;;  %v2405_v33 = vadd.f32 %v2404_v8, %v2375_v20 }
 0x499   :  { %v2422_v32 = vadd.f32 %v2421_v14, %v2420_v4 }
 0x49b   :  { %v2381_v30 = vpop.xlane.xlu1 %2380 }
 0x49c   :  { %v2402_v46 = vpop.xlane.xlu0 %2401  ;;  %v2406_v43 = vadd.f32 %v2405_v33, %v2381_v30 }
 0x49d   :  { %v2423_v39 = vsel %vm1031_vm3, %v2402_v46, 0.0 }
 0x49e   :  { %v2424_v19 = vadd.f32 %v2423_v39, %v2422_v32 }
 0x49f   :  { %v2387_v16 = vpop.xlane.xlu1 %2386 }
 0x4a0   :  { %v2426_v38 = vmul.f32 0.00390625, %v2424_v19  ;;  %v2407_v61 = vadd.f32 %v2406_v43, %v2387_v16 }
 0x4a2   :  { %v4065_v23 = vsub.f32 %v3908_v0, %v2426_v38  ;;  %v4068_v51 = vsub.f32 %v3888_v25, %v2426_v38  ;;  %v4077_v25 = vsub.f32 %v3932_v49, %v2426_v38  ;;  %v4095_v49 = vsub.f32 %v3944_v56, %v2426_v38 }
 0x4a3   :  { %v2393_v52 = vpop.xlane.xlu1 %2392  ;;  %v4107_v14 = vsub.f32 %v3952_v59, %v2426_v38  ;;  %v4119_v32 = vsub.f32 %v3974_v35, %v2426_v38  ;;  %v4131_v19 = vsub.f32 %v3996_v17, %v2426_v38 }
 0x4a4   :  { %v2446_v44 = vmul.f32 %v4065_v23, %v4065_v23  ;;  %v2444_v50 = vmul.f32 %v4068_v51, %v4068_v51  ;;  %v2408_v62 = vadd.f32 %v2407_v61, %v2393_v52  ;;  %v2448_v63 = vmul.f32 %v4077_v25, %v4077_v25 }
 0x4a5   :  { %v2450_v20 = vmul.f32 %v4095_v49, %v4095_v49  ;;  %v4143_v52 = vsub.f32 %v4018_v36, %v2426_v38 }
 0x4a6   :  { %v2468_v3 = vsel %vm2357_vm6, %v2446_v44, 0.0  ;;  %v2462_v60 = vsel %vm2357_vm6, %v2444_v50, 0.0  ;;  %v2474_v4 = vsel %vm2357_vm6, %v2448_v63, 0.0 }
 0x4a7   :  { %2469 = vadd.xlane.f32.xlu1 %v2468_v3  ;;  %2463 = vadd.xlane.f32.xlu0 %v2462_v60  ;;  %v2399_v0 = vpop.xlane.xlu1 %2398  ;;  %v2480_v46 = vsel %vm2357_vm6, %v2450_v20, 0.0  ;;  %v2458_v38 = vmul.f32 %v4143_v52, %v4143_v52 }
 0x4a8   :  { %v2409_v5 = vadd.f32 %v2408_v62, %v2399_v0 }
 0x4a9   :  { %v2504_v60 = vsel %vm2357_vm6, %v2458_v38, 0.0 }
 0x4aa   :  { %v2425_v6 = vmul.f32 0.00390625, %v2409_v5 }
 0x4ac   :  { %v4080_v10 = vsub.f32 %v3921_v42, %v2425_v6  ;;  %v4083_v7 = vsub.f32 %v3900_v34, %v2425_v6  ;;  %v4086_v2 = vsub.f32 %v3962_v1, %v2425_v6  ;;  %v4102_v18 = vsub.f32 %v3988_v15, %v2425_v6 }
 0x4ad   :  { %v4114_v45 = vsub.f32 %v4009_v9, %v2425_v6  ;;  %v2452_v15 = vmul.f32 %v4107_v14, %v4107_v14  ;;  %v4126_v8 = vsub.f32 %v4029_v55, %v2425_v6  ;;  %v2454_v9 = vmul.f32 %v4119_v32, %v4119_v32 }
 0x4ae   :  { %v2445_v11 = vmul.f32 %v4080_v10, %v4080_v10  ;;  %v2443_v58 = vmul.f32 %v4083_v7, %v4083_v7  ;;  %v2447_v1 = vmul.f32 %v4086_v2, %v4086_v2  ;;  %v2449_v30 = vmul.f32 %v4102_v18, %v4102_v18 }
 0x4af   :  { %v2451_v39 = vmul.f32 %v4114_v45, %v4114_v45  ;;  %v2486_v16 = vsel %vm2357_vm6, %v2452_v15, 0.0  ;;  %v2453_v33 = vmul.f32 %v4126_v8, %v4126_v8  ;;  %v4138_v43 = vsub.f32 %v4042_v40, %v2425_v6 }
 0x4b0   :  { %v2465_v42 = vsel %vm94_vm0, %v2445_v11, 0.0  ;;  %v2459_v34 = vsel %vm94_vm0, %v2443_v58, 0.0  ;;  %v2471_v56 = vsel %vm94_vm0, %v2447_v1, 0.0  ;;  %v2477_v59 = vsel %vm94_vm0, %v2449_v30, 0.0 }
 0x4b1   :  { %2466 = vadd.xlane.f32.xlu1 %v2465_v42  ;;  %2460 = vadd.xlane.f32.xlu0 %v2459_v34  ;;  %v2483_v35 = vsel %vm94_vm0, %v2451_v39, 0.0  ;;  %v2456_v55 = vmul.f32 %v4131_v19, %v4131_v19  ;;  %v2489_v17 = vsel %vm94_vm0, %v2453_v33, 0.0  ;;  %v2492_v61 = vsel %vm2357_vm6, %v2454_v9, 0.0 }
 0x4b2   :  { %v2455_v44 = vmul.f32 %v4138_v43, %v4138_v43  ;;  %v4150_v50 = vsub.f32 %v4052_v22, %v2425_v6 }
 0x4b3   :  { %v2498_v62 = vsel %vm2357_vm6, %v2456_v55, 0.0 }
 0x4b4   :  { %v2495_v40 = vsel %vm94_vm0, %v2455_v44, 0.0  ;;  %v2457_v36 = vmul.f32 %v4150_v50, %v4150_v50 }
 0x4b5   :  { %2472 = vadd.xlane.f32.xlu1 %v2471_v56  ;;  %2475 = vadd.xlane.f32.xlu0 %v2474_v4 }
 0x4b6   :  { %v2501_v3 = vsel %vm94_vm0, %v2457_v36, 0.0 }
 0x4b9   :  { %2478 = vadd.xlane.f32.xlu1 %v2477_v59  ;;  %2481 = vadd.xlane.f32.xlu0 %v2480_v46 }
 0x4bd   :  { %2484 = vadd.xlane.f32.xlu1 %v2483_v35  ;;  %2487 = vadd.xlane.f32.xlu0 %v2486_v16 }
 0x4c1   :  { %2490 = vadd.xlane.f32.xlu1 %v2489_v17  ;;  %2493 = vadd.xlane.f32.xlu0 %v2492_v61 }
 0x4c5   :  { %2496 = vadd.xlane.f32.xlu1 %v2495_v40  ;;  %2499 = vadd.xlane.f32.xlu0 %v2498_v62 }
 0x4c9   :  { %2502 = vadd.xlane.f32.xlu1 %v2501_v3  ;;  %2505 = vadd.xlane.f32.xlu0 %v2504_v60 }
 0x534   :  { %v2464_v22 = vpop.xlane.xlu0 %2463  ;;  %v2470_v0 = vpop.xlane.xlu1 %2469 }
 0x535   :  { %v2514_v34 = vsel %vm1031_vm3, %v2464_v22, 0.0  ;;  %v2515_v1 = vsel %vm1031_vm3, %v2470_v0, 0.0 }
 0x536   :  { %v2516_v15 = vadd.f32 %v2515_v1, %v2514_v34 }
 0x53e   :  { %v2461_v5 = vpop.xlane.xlu0 %2460  ;;  %v2467_v6 = vpop.xlane.xlu1 %2466 }
 0x53f   :  { %v2507_v4 = vadd.f32 %v2467_v6, %v2461_v5 }
 0x542   :  { %v2476_v11 = vpop.xlane.xlu0 %2475  ;;  %v2473_v58 = vpop.xlane.xlu1 %2472 }
 0x543   :  { %v2517_v30 = vsel %vm1031_vm3, %v2476_v11, 0.0  ;;  %v2508_v59 = vadd.f32 %v2507_v4, %v2473_v58 }
 0x544   :  { %v2518_v39 = vadd.f32 %v2517_v30, %v2516_v15 }
 0x546   :  { %v2482_v63 = vpop.xlane.xlu0 %2481  ;;  %v2479_v42 = vpop.xlane.xlu1 %2478 }
 0x547   :  { %v2519_v46 = vsel %vm1031_vm3, %v2482_v63, 0.0  ;;  %v2509_v16 = vadd.f32 %v2508_v59, %v2479_v42 }
 0x548   :  { %v2520_v55 = vadd.f32 %v2519_v46, %v2518_v39  ;;  %v2566_v46 = vld [vmem:[%s4282_s6 + $0x8] sm:$0xf]  ;;  %v2565_v39 = vld [vmem:[%s4282_s6] sm:$0xff] }
 0x54a   :  { %v2488_v20 = vpop.xlane.xlu0 %2487  ;;  %v2485_v56 = vpop.xlane.xlu1 %2484 }
 0x54b   :  { %v2521_v33 = vsel %vm1031_vm3, %v2488_v20, 0.0  ;;  %v2510_v17 = vadd.f32 %v2509_v16, %v2485_v56  ;;  %v2531_v20 = vld [vmem:[%s4281_s5] sm:$0xff]  ;;  %v2532_v56 = vld [vmem:[%s4281_s5 + $0x8] sm:$0xf] }
 0x54c   :  { %v2522_v44 = vadd.f32 %v2521_v33, %v2520_v55 }
 0x54e   :  { %v2494_v9 = vpop.xlane.xlu0 %2493  ;;  %v2491_v35 = vpop.xlane.xlu1 %2490 }
 0x54f   :  { %v2523_v61 = vsel %vm1031_vm3, %v2494_v9, 0.0  ;;  %v2511_v36 = vadd.f32 %v2510_v17, %v2491_v35 }
 0x550   :  { %v2524_v3 = vadd.f32 %v2523_v61, %v2522_v44 }
 0x552   :  { %v2500_v40 = vpop.xlane.xlu0 %2499  ;;  %v2497_v62 = vpop.xlane.xlu1 %2496 }
 0x553   :  { %v2525_v38 = vsel %vm1031_vm3, %v2500_v40, 0.0  ;;  %v2512_v60 = vadd.f32 %v2511_v36, %v2497_v62 }
 0x554   :  { %v2526_v22 = vadd.f32 %v2525_v38, %v2524_v3 }
 0x556   :  { %v2506_v0 = vpop.xlane.xlu0 %2505  ;;  %v2503_v5 = vpop.xlane.xlu1 %2502 }
 0x557   :  { %v2527_v6 = vsel %vm1031_vm3, %v2506_v0, 0.0  ;;  %v2513_v11 = vadd.f32 %v2512_v60, %v2503_v5 }
 0x558   :  { %v2528_v58 = vadd.f32 %v2527_v6, %v2526_v22 }
 0x559   :  { %v2529_v63 = vmul.f32 0.00390625, %v2513_v11 }
 0x55a   :  { %v2530_v42 = vmul.f32 0.00390625, %v2528_v58 }
 0x55b   :  { %v2533_v34 = vadd.f32 1e-05, %v2529_v63 }
 0x55c   :  { %v2534_v1 = vadd.f32 1e-05, %v2530_v42 }
 0x55d   :  { %3265 = vrsqrt.f32 %v2533_v34 }
 0x55e   :  { %3267 = vrsqrt.f32 %v2534_v1 }
 0x567   :  { %v3266_v4 = vpop.eup %3265 }
 0x568   :  { %v3268_v30 = vpop.eup %3267  ;;  %v2537_v15 = vmul.f32 %v3266_v4, %v2531_v20 }
 0x569   :  { %v2538_v59 = vmul.f32 %v3268_v30, %v2532_v56 }
 0x56a   :  { %2541 = vperm.xlu0 %3183, %v2537_v15  }
 0x56b   :  { %2546 = vperm.xlu1 %3184, %v2538_v59  }
 0x56e   :  { %2574 = vperm.xlu0 %3183, %v2566_v46  }
 0x56f   :  { %2569 = vperm.xlu1 %3184, %v2565_v39  }
 0x5e9   :  { %v2542_v9 = vpop.permute.xlu0 %2541 }
 0x5ea   :  { %v2547_v35 = vpop.permute.xlu1 %2546  ;;  %v2549_v16 = vmul.f32 %v2542_v9, %v4083_v7  ;;  %v2551_v33 = vmul.f32 %v2542_v9, %v4080_v10  ;;  %v2553_v55 = vmul.f32 %v2542_v9, %v4086_v2  ;;  %v2555_v17 = vmul.f32 %v2542_v9, %v4102_v18 }
 0x5eb   :  { %v2550_v61 = vmul.f32 %v2547_v35, %v4068_v51  ;;  %v2552_v44 = vmul.f32 %v2547_v35, %v4065_v23  ;;  %v2554_v40 = vmul.f32 %v2547_v35, %v4077_v25  ;;  %v2556_v62 = vmul.f32 %v2547_v35, %v4095_v49 }
 0x5ec   :  { %v2558_v36 = vmul.f32 %v2547_v35, %v4107_v14  ;;  %v2560_v38 = vmul.f32 %v2547_v35, %v4119_v32  ;;  %v2562_v7 = vmul.f32 %v2547_v35, %v4131_v19  ;;  %v2564_v10 = vmul.f32 %v2547_v35, %v4143_v52 }
 0x5ed   :  { %v2575_v3 = vpop.permute.xlu0 %2574  ;;  %v2557_v2 = vmul.f32 %v2542_v9, %v4114_v45  ;;  %v2559_v18 = vmul.f32 %v2542_v9, %v4126_v8  ;;  %v2561_v51 = vmul.f32 %v2542_v9, %v4138_v43  ;;  %v2563_v23 = vmul.f32 %v2542_v9, %v4150_v50 }
 0x5ee   :  { %v2578_v25 = vadd.f32 %v2575_v3, %v2550_v61  ;;  %v2580_v60 = vadd.f32 %v2575_v3, %v2552_v44  ;;  %v2582_v49 = vadd.f32 %v2575_v3, %v2554_v40  ;;  %v2584_v22 = vadd.f32 %v2575_v3, %v2556_v62  ;;  %v2570_v42 = vpop.permute.xlu1 %2569 }
 0x5ef   :  { %v2586_v14 = vadd.f32 %v2575_v3, %v2558_v36  ;;  %v2588_v0 = vadd.f32 %v2575_v3, %v2560_v38  ;;  %v2590_v32 = vadd.f32 %v2575_v3, %v2562_v7  ;;  %v2592_v5 = vadd.f32 %v2575_v3, %v2564_v10 }
 0x5f0   :  { %v2594_v19 = vmax.f32 %v2578_v25, 0.0  ;;  %v2596_v6 = vmax.f32 %v2580_v60, 0.0  ;;  %v2598_v52 = vmax.f32 %v2582_v49, 0.0  ;;  %v2600_v11 = vmax.f32 %v2584_v22, 0.0 }
 0x5f1   :  { %v2602_v58 = vmax.f32 %v2586_v14, 0.0  ;;  %v2604_v45 = vmax.f32 %v2588_v0, 0.0  ;;  %v2606_v63 = vmax.f32 %v2590_v32, 0.0  ;;  %v2608_v8 = vmax.f32 %v2592_v5, 0.0 }
 0x5f2   :  { %v2610_v43 = vadd.f32 %v3885_v24, %v2594_v19  ;;  %v2612_v50 = vadd.f32 %v3905_v29, %v2596_v6  ;;  %v2614_v34 = vadd.f32 %v3929_v47, %v2598_v52  ;;  %v2616_v1 = vadd.f32 %v3941_v53, %v2600_v11 }
 0x5f3   :  { %v2618_v20 = vadd.f32 %v3949_v57, %v2602_v58  ;;  %v2620_v56 = vadd.f32 %v3971_v54, %v2604_v45  ;;  %v2622_v4 = vadd.f32 %v3993_v27, %v2606_v63  ;;  %v2624_v30 = vadd.f32 %v4015_v26, %v2608_v8 }
 0x5f4   :  { %2626 = vst.msk [vmem:[%s4283_s7 + $0x8] sm:$0xf] %vm2357_vm6, %v2610_v43  ;;  %2628 = vst.msk [vmem:[%s4283_s7 + $0x18] sm:$0xf] %vm2357_vm6, %v2612_v50  ;;  %v2577_v24 = vadd.f32 %v2570_v42, %v2549_v16  ;;  %v2579_v29 = vadd.f32 %v2570_v42, %v2551_v33  ;;  %v2581_v47 = vadd.f32 %v2570_v42, %v2553_v55 }
 0x5f5   :  { %2630 = vst.msk [vmem:[%s4283_s7 + $0x28] sm:$0xf] %vm2357_vm6, %v2614_v34  ;;  %2632 = vst.msk [vmem:[%s4283_s7 + $0x38] sm:$0xf] %vm2357_vm6, %v2616_v1  ;;  %v2583_v53 = vadd.f32 %v2570_v42, %v2555_v17  ;;  %v2585_v57 = vadd.f32 %v2570_v42, %v2557_v2  ;;  %v2587_v54 = vadd.f32 %v2570_v42, %v2559_v18 }
 0x5f6   :  { %2634 = vst.msk [vmem:[%s4283_s7 + $0x48] sm:$0xf] %vm2357_vm6, %v2618_v20  ;;  %2636 = vst.msk [vmem:[%s4283_s7 + $0x58] sm:$0xf] %vm2357_vm6, %v2620_v56  ;;  %v2589_v27 = vadd.f32 %v2570_v42, %v2561_v51  ;;  %v2591_v26 = vadd.f32 %v2570_v42, %v2563_v23  ;;  %v2593_v15 = vmax.f32 %v2577_v24, 0.0  ;;  %v2595_v59 = vmax.f32 %v2579_v29, 0.0 }
 0x5f7   :  { %2638 = vst.msk [vmem:[%s4283_s7 + $0x68] sm:$0xf] %vm2357_vm6, %v2622_v4  ;;  %2640 = vst.msk [vmem:[%s4283_s7 + $0x78] sm:$0xf] %vm2357_vm6, %v2624_v30  ;;  %v2597_v46 = vmax.f32 %v2581_v47, 0.0  ;;  %v2599_v39 = vmax.f32 %v2583_v53, 0.0 }
 0x5f8   :  { %v2601_v9 = vmax.f32 %v2585_v57, 0.0  ;;  %v2603_v35 = vmax.f32 %v2587_v54, 0.0  ;;  %v2605_v16 = vmax.f32 %v2589_v27, 0.0  ;;  %v2607_v33 = vmax.f32 %v2591_v26, 0.0 }
 0x5f9   :  { %v2609_v55 = vadd.f32 %v3897_v13, %v2593_v15  ;;  %v2611_v17 = vadd.f32 %v3918_v28, %v2595_v59  ;;  %v2613_v61 = vadd.f32 %v3959_v31, %v2597_v46  ;;  %v2615_v44 = vadd.f32 %v3985_v12, %v2599_v39 }
 0x5fa   :  { %v2617_v40 = vadd.f32 %v4006_v21, %v2601_v9  ;;  %v2619_v62 = vadd.f32 %v4026_v37, %v2603_v35  ;;  %v2621_v36 = vadd.f32 %v4039_v41, %v2605_v16  ;;  %v2623_v38 = vadd.f32 %v4049_v48, %v2607_v33 }
 0x5fb   :  { %2625 = vst.msk [vmem:[%s4283_s7] sm:$0xff] %vm94_vm0, %v2609_v55  ;;  %2627 = vst.msk [vmem:[%s4283_s7 + $0x10] sm:$0xff] %vm94_vm0, %v2611_v17 }
 0x5fc   :  { %2629 = vst.msk [vmem:[%s4283_s7 + $0x20] sm:$0xff] %vm94_vm0, %v2613_v61  ;;  %2631 = vst.msk [vmem:[%s4283_s7 + $0x30] sm:$0xff] %vm94_vm0, %v2615_v44 }
 0x5fd   :  { %2633 = vst.msk [vmem:[%s4283_s7 + $0x40] sm:$0xff] %vm94_vm0, %v2617_v40  ;;  %2635 = vst.msk [vmem:[%s4283_s7 + $0x50] sm:$0xff] %vm94_vm0, %v2619_v62 }
 0x5fe   :  { %2637 = vst.msk [vmem:[%s4283_s7 + $0x60] sm:$0xff] %vm94_vm0, %v2621_v36  ;;  %2639 = vst.msk [vmem:[%s4283_s7 + $0x70] sm:$0xff] %vm94_vm0, %v2623_v38 }

</bundles_post_ra>
